<compile_context>
chip_gen: v5e
topology: v5e:2x2
jax: 0.10.0
libtpu: 0.0.40
codegen_flags: <defaults>
</compile_context>

<pallas_src>
import jax
import jax.numpy as jnp
from jax.experimental import pallas as pl
from jax.experimental.pallas import tpu as pltpu


# ----------------------------------------------------------------------------
# Kernel 1 (prologue): row-tiled feature transform   G = X @ W
# ----------------------------------------------------------------------------
def xw_kernel(x_ref, w_ref, g_ref):
    g_ref[...] = jnp.dot(
        x_ref[...], w_ref[...], preferred_element_type=jnp.float32
    ).astype(g_ref.dtype)


def feature_transform(x_bf16, w_bf16, *, tm):
    n, cin = x_bf16.shape
    cout = w_bf16.shape[1]
    flops = int(2 * n * cin * cout)
    bytes_accessed = int(x_bf16.size * 2 + w_bf16.size * 2 + n * cout * 2)
    return pl.pallas_call(
        xw_kernel,
        out_shape=jax.ShapeDtypeStruct((n, cout), jnp.bfloat16),
        grid_spec=pltpu.PrefetchScalarGridSpec(
            num_scalar_prefetch=0,
            grid=(n // tm,),
            in_specs=[
                pl.BlockSpec((tm, cin), lambda i: (i, 0)),    # X row tile
                pl.BlockSpec((cin, cout), lambda i: (0, 0)),  # full W (small)
            ],
            out_specs=pl.BlockSpec((tm, cout), lambda i: (i, 0)),
        ),
        compiler_params=pltpu.CompilerParams(
            dimension_semantics=("parallel",),
            vmem_limit_bytes=48 * 1024 * 1024,
        ),
        cost_estimate=pl.CostEstimate(
            flops=flops, transcendentals=0, bytes_accessed=bytes_accessed
        ),
    )(x_bf16, w_bf16)


# ----------------------------------------------------------------------------
# Kernel 2: propagation  acc_i += A[i,k] @ G[k]   (reduction over A's columns)
#   fused variant   : out_i = relu(acc_i + b) @ W_next   (bf16 out)
#   plain variant   : out_i = acc_i + b                  (final layer)
# grid = (N/tm row tiles [parallel],  N/tk reduction steps [arbitrary, last])
# ----------------------------------------------------------------------------
def propagate_fused_kernel(a_ref, g_ref, b_ref, w_next_ref, out_ref, acc_ref):
    k = pl.program_id(1)

    @pl.when(k == 0)
    def _init():
        acc_ref[...] = jnp.zeros_like(acc_ref)

    acc_ref[...] += jnp.dot(
        a_ref[...], g_ref[...], preferred_element_type=jnp.float32
    )

    @pl.when(k == pl.num_programs(1) - 1)
    def _finalize():
        h = jnp.maximum(acc_ref[...] + b_ref[...], 0.0)   # f32 bias + ReLU
        out_ref[...] = jnp.dot(                            # fused next-layer lin
            h.astype(jnp.bfloat16), w_next_ref[...],
            preferred_element_type=jnp.float32,
        ).astype(out_ref.dtype)


def propagate_plain_kernel(a_ref, g_ref, b_ref, out_ref, acc_ref):
    k = pl.program_id(1)

    @pl.when(k == 0)
    def _init():
        acc_ref[...] = jnp.zeros_like(acc_ref)

    acc_ref[...] += jnp.dot(
        a_ref[...], g_ref[...], preferred_element_type=jnp.float32
    )

    @pl.when(k == pl.num_programs(1) - 1)
    def _finalize():
        out_ref[...] = (acc_ref[...] + b_ref[...]).astype(out_ref.dtype)


def propagate(a_bf16, g_bf16, b_f32, w_next_bf16, *, out_dtype, tm, tk):
    n = a_bf16.shape[0]
    c = g_bf16.shape[1]
    cout = c if w_next_bf16 is None else w_next_bf16.shape[1]

    in_specs = [
        pl.BlockSpec((tm, tk), lambda i, k: (i, k)),   # A_hat tile
        pl.BlockSpec((tk, c), lambda i, k: (k, 0)),    # G rows for this k step
        pl.BlockSpec((1, c), lambda i, k: (0, 0)),     # bias (full, tiny)
    ]
    operands = [a_bf16, g_bf16, b_f32]
    if w_next_bf16 is None:
        kernel = propagate_plain_kernel
        flops = int(2 * n * n * c)
    else:
        kernel = propagate_fused_kernel
        in_specs.append(pl.BlockSpec((c, cout), lambda i, k: (0, 0)))
        operands.append(w_next_bf16)
        flops = int(2 * n * n * c + 2 * n * c * cout)

    bytes_accessed = int(
        a_bf16.size * 2 + g_bf16.size * 2 + b_f32.size * 4
        + (0 if w_next_bf16 is None else w_next_bf16.size * 2)
        + n * cout * jnp.dtype(out_dtype).itemsize
    )

    return pl.pallas_call(
        kernel,
        out_shape=jax.ShapeDtypeStruct((n, cout), out_dtype),
        grid_spec=pltpu.PrefetchScalarGridSpec(
            num_scalar_prefetch=0,
            grid=(n // tm, n // tk),
            in_specs=in_specs,
            out_specs=pl.BlockSpec((tm, cout), lambda i, k: (i, 0)),
            scratch_shapes=[pltpu.VMEM((tm, c), jnp.float32)],
        ),
        compiler_params=pltpu.CompilerParams(
            dimension_semantics=("parallel", "arbitrary"),
            vmem_limit_bytes=48 * 1024 * 1024,   # fits v7x's 64 MiB with headroom
        ),
        cost_estimate=pl.CostEstimate(
            flops=flops, transcendentals=0, bytes_accessed=bytes_accessed
        ),
    )(*operands)


# ----------------------------------------------------------------------------
# Glue: dense symmetric-normalized adjacency with self loops (PyG gcn_norm).
# ----------------------------------------------------------------------------
def build_norm_adj(edge_index, num_nodes):
    src = edge_index[0]
    dst = edge_index[1]
    loop = jnp.arange(num_nodes, dtype=src.dtype)
    src = jnp.concatenate([src, loop])
    dst = jnp.concatenate([dst, loop])
    w = jnp.ones(src.shape[0], jnp.float32)

    deg = jnp.zeros(num_nodes, jnp.float32).at[dst].add(w)
    deg_inv_sqrt = jnp.where(deg > 0, 1.0 / jnp.sqrt(deg), 0.0)
    norm = deg_inv_sqrt[src] * deg_inv_sqrt[dst] * w

    a_hat = jnp.zeros((num_nodes, num_nodes), jnp.float32)
    a_hat = a_hat.at[dst, src].add(norm)   # message j -> i lands in row i
    return a_hat


def _round_up(v, m):
    return ((v + m - 1) // m) * m


def _pad2(x, rows, cols):
    return jnp.pad(x, ((0, rows - x.shape[0]), (0, cols - x.shape[1])))


def _pick_tile(n_pad, target):
    t = min(target, n_pad)
    while n_pad % t:
        t -= 128
    return t


def gae_encoder(x, edge_index, w1, b1, w2, b2):
    """x: [N, Cin] f32, edge_index: [2, E] int32 -> [N, Cout] f32."""
    n, in_ch = x.shape
    hidden = w1.shape[1]
    out_ch = w2.shape[1]

    n_pad = _round_up(n, 128)
    cin_pad = _round_up(in_ch, 128)
    hid_pad = _round_up(hidden, 128)
    cout_pad = _round_up(out_ch, 128)

    tm = _pick_tile(n_pad, 256)    # output-row tile
    tk = _pick_tile(n_pad, 512)    # A-reduction tile
    tmx = _pick_tile(n_pad, 512)   # row tile for the X @ W prologue

    # bf16 MXU operands; zero padding keeps results exact.
    a = _pad2(build_norm_adj(edge_index, n), n_pad, n_pad).astype(jnp.bfloat16)
    xp = _pad2(x, n_pad, cin_pad).astype(jnp.bfloat16)
    w1p = _pad2(w1, cin_pad, hid_pad).astype(jnp.bfloat16)
    b1p = _pad2(b1.reshape(1, -1), 1, hid_pad).astype(jnp.float32)
    w2p = _pad2(w2, hid_pad, cout_pad).astype(jnp.bfloat16)
    b2p = _pad2(b2.reshape(1, -1), 1, cout_pad).astype(jnp.float32)

    # G1 = X @ W1 (computed exactly once, bf16 through HBM).
    g1 = feature_transform(xp, w1p, tm=tmx)
    # Layer 1 propagation + fused layer-2 linear: G2 = relu(A @ G1 + b1) @ W2.
    g2 = propagate(a, g1, b1p, w2p, out_dtype=jnp.bfloat16, tm=tm, tk=tk)
    # Layer 2 propagation: out = A @ G2 + b2 (f32 result).
    out = propagate(a, g2, b2p, None, out_dtype=jnp.float32, tm=tm, tk=tk)
    return out[:n, :out_ch]


# ----------------------------------------------------------------------------
# Deterministic parameter init (glorot-style weights, zero bias — same shapes
# as GCNConv(in, 2*out) / GCNConv(2*out, out)).
# ----------------------------------------------------------------------------
def init_params(key, in_channels, out_channels):
    hidden = 2 * out_channels
    k1, k2 = jax.random.split(key)

    def glorot(k, fan_in, fan_out):
        limit = jnp.sqrt(6.0 / (fan_in + fan_out))
        return jax.random.uniform(k, (fan_in, fan_out), jnp.float32, -limit, limit)

    w1 = glorot(k1, in_channels, hidden)           # conv1.lin.weight^T
    b1 = jnp.zeros((hidden,), jnp.float32)         # conv1.bias
    w2 = glorot(k2, hidden, out_channels)          # conv2.lin.weight^T
    b2 = jnp.zeros((out_channels,), jnp.float32)   # conv2.bias
    return w1, b1, w2, b2


if __name__ == "__main__":
    N = 256           # nodes (multiple of the 128-row tile)
    IN_CH = 8
    OUT_CH = 8        # -> hidden = 16

    key = jax.random.PRNGKey(0)
    k_x, k_e, k_p = jax.random.split(key, 3)

    # Node features.
    x = jax.random.normal(k_x, (N, IN_CH), jnp.float32)

    # Deterministic edge set: directed ring both ways + a few random edges.
    ring_src = jnp.arange(N, dtype=jnp.int32)
    ring_dst = (ring_src + 1) % N
    rnd_src = jax.random.randint(k_e, (32,), 0, N, jnp.int32)
    rnd_dst = jnp.flip(rnd_src)
    src = jnp.concatenate([ring_src, ring_dst, rnd_src])
    dst = jnp.concatenate([ring_dst, ring_src, rnd_dst])
    edge_index = jnp.stack([src, dst], axis=0)    # [2, E]

    w1, b1, w2, b2 = init_params(k_p, IN_CH, OUT_CH)

    fwd = jax.jit(gae_encoder)
    out = fwd(x, edge_index, w1, b1, w2, b2)
    jax.block_until_ready(out)
    assert out.shape == (N, OUT_CH)
    assert bool(jnp.all(jnp.isfinite(out)))
    print("KERNEL_OK")
</pallas_src>

<mosaic_0001>
module attributes {stable_mosaic.version = 11 : i64} {
  func.func @xw_kernel(%arg0: i32, %arg1: memref<256x128xbf16, #tpu.memory_space<vmem>>, %arg2: memref<128x128xbf16, #tpu.memory_space<vmem>>, %arg3: memref<256x128xbf16, #tpu.memory_space<vmem>>) attributes {dimension_semantics = [#tpu.dimension_semantics<parallel>], iteration_bounds = array<i64: 1>, scalar_prefetch = 0 : i64, scratch_operands = 0 : i64, tpu.core_type = #tpu.core_type<tc>, window_params = [{transform_indices = @transform_0, window_bounds = array<i64: 256, 128>}, {pipeline_mode = #tpu.pipeline_mode<synchronous>, transform_indices = @transform_1, window_bounds = array<i64: 128, 128>}, {transform_indices = @transform_2, window_bounds = array<i64: 256, 128>}]} {
    %c0 = arith.constant 0 : index
    %c0_0 = arith.constant 0 : index
    %0 = vector.load %arg1[%c0, %c0_0] : memref<256x128xbf16, #tpu.memory_space<vmem>>, vector<256x128xbf16>
    %c0_1 = arith.constant 0 : index
    %c0_2 = arith.constant 0 : index
    %1 = vector.load %arg2[%c0_1, %c0_2] : memref<128x128xbf16, #tpu.memory_space<vmem>>, vector<128x128xbf16>
    %cst = arith.constant dense<0.000000e+00> : vector<256x128xf32>
    %2 = tpu.matmul %0, %1, %cst {dimension_numbers = #tpu.dot_dimension_numbers<[1], [0], [0], [1], [0, 0, 1, 1], [], []>} : vector<256x128xbf16>, vector<128x128xbf16>, vector<256x128xf32> -> vector<256x128xf32>
    %3 = arith.truncf %2 : vector<256x128xf32> to vector<256x128xbf16>
    %c0_3 = arith.constant 0 : index
    %c0_4 = arith.constant 0 : index
    %4 = vector.load %arg3[%c0_3, %c0_4] : memref<256x128xbf16, #tpu.memory_space<vmem>>, vector<256x128xbf16>
    tpu.vector_store %arg3[%c0_3, %c0_4], %3 {strides = array<i32>} : memref<256x128xbf16, #tpu.memory_space<vmem>>, vector<256x128xbf16>,
    return
  }
  func.func @transform_0(%arg0: i32) -> (i32, i32) {
    %c0_i32 = arith.constant 0 : i32
    %c0_i32_0 = arith.constant 0 : i32
    return %arg0, %c0_i32 : i32, i32
  }
  func.func @transform_1(%arg0: i32) -> (i32, i32) {
    %c0_i32 = arith.constant 0 : i32
    %c0_i32_0 = arith.constant 0 : i32
    %c0_i32_1 = arith.constant 0 : i32
    return %c0_i32, %c0_i32_0 : i32, i32
  }
  func.func @transform_2(%arg0: i32) -> (i32, i32) {
    %c0_i32 = arith.constant 0 : i32
    %c0_i32_0 = arith.constant 0 : i32
    return %arg0, %c0_i32 : i32, i32
  }
}

module attributes {stable_mosaic.version = 11 : i64} {
  func.func @propagate_fused_kernel(%arg0: i32, %arg1: i32, %arg2: memref<256x256xbf16, #tpu.memory_space<vmem>>, %arg3: memref<256x128xbf16, #tpu.memory_space<vmem>>, %arg4: memref<1x128xf32, #tpu.memory_space<vmem>>, %arg5: memref<128x128xbf16, #tpu.memory_space<vmem>>, %arg6: memref<256x128xbf16, #tpu.memory_space<vmem>>, %arg7: memref<256x128xf32, #tpu.memory_space<vmem>>) attributes {dimension_semantics = [#tpu.dimension_semantics<parallel>, #tpu.dimension_semantics<arbitrary>], iteration_bounds = array<i64: 1, 1>, scalar_prefetch = 0 : i64, scratch_operands = 1 : i64, tpu.core_type = #tpu.core_type<tc>, window_params = [{transform_indices = @transform_0, window_bounds = array<i64: 256, 256>}, {transform_indices = @transform_1, window_bounds = array<i64: 256, 128>}, {pipeline_mode = #tpu.pipeline_mode<synchronous>, transform_indices = @transform_2, window_bounds = array<i64: 1, 128>}, {pipeline_mode = #tpu.pipeline_mode<synchronous>, transform_indices = @transform_3, window_bounds = array<i64: 128, 128>}, {transform_indices = @transform_4, window_bounds = array<i64: 256, 128>}]} {
    %c0_i32 = arith.constant 0 : i32
    %0 = arith.cmpi eq, %arg1, %c0_i32 : i32
    %1 = arith.extui %0 : i1 to i32
    %c0_i32_0 = arith.constant 0 : i32
    %2 = arith.cmpi ne, %1, %c0_i32_0 : i32
    scf.if %2 {
      %cst_10 = arith.constant 0.000000e+00 : f32
      %12 = vector.broadcast %cst_10 : f32 to vector<256x128xf32>
      %c0_11 = arith.constant 0 : index
      %c0_12 = arith.constant 0 : index
      %13 = vector.load %arg7[%c0_11, %c0_12] : memref<256x128xf32, #tpu.memory_space<vmem>>, vector<256x128xf32>
      tpu.vector_store %arg7[%c0_11, %c0_12], %12 {strides = array<i32>} : memref<256x128xf32, #tpu.memory_space<vmem>>, vector<256x128xf32>,
    } else {
    }
    %c0 = arith.constant 0 : index
    %c0_1 = arith.constant 0 : index
    %3 = vector.load %arg7[%c0, %c0_1] : memref<256x128xf32, #tpu.memory_space<vmem>>, vector<256x128xf32>
    %c0_2 = arith.constant 0 : index
    %c0_3 = arith.constant 0 : index
    %4 = vector.load %arg2[%c0_2, %c0_3] : memref<256x256xbf16, #tpu.memory_space<vmem>>, vector<256x256xbf16>
    %c0_4 = arith.constant 0 : index
    %c0_5 = arith.constant 0 : index
    %5 = vector.load %arg3[%c0_4, %c0_5] : memref<256x128xbf16, #tpu.memory_space<vmem>>, vector<256x128xbf16>
    %cst = arith.constant dense<0.000000e+00> : vector<256x128xf32>
    %6 = tpu.matmul %4, %5, %cst {dimension_numbers = #tpu.dot_dimension_numbers<[1], [0], [0], [1], [0, 0, 1, 1], [], []>} : vector<256x256xbf16>, vector<256x128xbf16>, vector<256x128xf32> -> vector<256x128xf32>
    %7 = arith.addf %3, %6 : vector<256x128xf32>
    %c0_6 = arith.constant 0 : index
    %c0_7 = arith.constant 0 : index
    %8 = vector.load %arg7[%c0_6, %c0_7] : memref<256x128xf32, #tpu.memory_space<vmem>>, vector<256x128xf32>
    tpu.vector_store %arg7[%c0_6, %c0_7], %7 {strides = array<i32>} : memref<256x128xf32, #tpu.memory_space<vmem>>, vector<256x128xf32>,
    %c0_i32_8 = arith.constant 0 : i32
    %9 = arith.cmpi eq, %arg1, %c0_i32_8 : i32
    %10 = arith.extui %9 : i1 to i32
    %c0_i32_9 = arith.constant 0 : i32
    %11 = arith.cmpi ne, %10, %c0_i32_9 : i32
    scf.if %11 {
      %c0_10 = arith.constant 0 : index
      %c0_11 = arith.constant 0 : index
      %12 = vector.load %arg7[%c0_10, %c0_11] : memref<256x128xf32, #tpu.memory_space<vmem>>, vector<256x128xf32>
      %c0_12 = arith.constant 0 : index
      %c0_13 = arith.constant 0 : index
      %13 = vector.load %arg4[%c0_12, %c0_13] : memref<1x128xf32, #tpu.memory_space<vmem>>, vector<1x128xf32>
      %14 = vector.broadcast %13 : vector<1x128xf32> to vector<256x128xf32>
      %15 = arith.addf %12, %14 : vector<256x128xf32>
      %cst_14 = arith.constant 0.000000e+00 : f32
      %16 = vector.broadcast %cst_14 : f32 to vector<256x128xf32>
      %17 = arith.maximumf %15, %16 : vector<256x128xf32>
      %18 = arith.truncf %17 : vector<256x128xf32> to vector<256x128xbf16>
      %c0_15 = arith.constant 0 : index
      %c0_16 = arith.constant 0 : index
      %19 = vector.load %arg5[%c0_15, %c0_16] : memref<128x128xbf16, #tpu.memory_space<vmem>>, vector<128x128xbf16>
      %cst_17 = arith.constant dense<0.000000e+00> : vector<256x128xf32>
      %20 = tpu.matmul %18, %19, %cst_17 {dimension_numbers = #tpu.dot_dimension_numbers<[1], [0], [0], [1], [0, 0, 1, 1], [], []>} : vector<256x128xbf16>, vector<128x128xbf16>, vector<256x128xf32> -> vector<256x128xf32>
      %21 = arith.truncf %20 : vector<256x128xf32> to vector<256x128xbf16>
      %c0_18 = arith.constant 0 : index
      %c0_19 = arith.constant 0 : index
      %22 = vector.load %arg6[%c0_18, %c0_19] : memref<256x128xbf16, #tpu.memory_space<vmem>>, vector<256x128xbf16>
      tpu.vector_store %arg6[%c0_18, %c0_19], %21 {strides = array<i32>} : memref<256x128xbf16, #tpu.memory_space<vmem>>, vector<256x128xbf16>,
    } else {
    }
    return
  }
  func.func @transform_0(%arg0: i32, %arg1: i32) -> (i32, i32) {
    %c0_i32 = arith.constant 0 : i32
    return %arg0, %arg1 : i32, i32
  }
  func.func @transform_1(%arg0: i32, %arg1: i32) -> (i32, i32) {
    %c0_i32 = arith.constant 0 : i32
    %c0_i32_0 = arith.constant 0 : i32
    return %arg1, %c0_i32 : i32, i32
  }
  func.func @transform_2(%arg0: i32, %arg1: i32) -> (i32, i32) {
    %c0_i32 = arith.constant 0 : i32
    %c0_i32_0 = arith.constant 0 : i32
    %c0_i32_1 = arith.constant 0 : i32
    return %c0_i32, %c0_i32_0 : i32, i32
  }
  func.func @transform_3(%arg0: i32, %arg1: i32) -> (i32, i32) {
    %c0_i32 = arith.constant 0 : i32
    %c0_i32_0 = arith.constant 0 : i32
    %c0_i32_1 = arith.constant 0 : i32
    return %c0_i32, %c0_i32_0 : i32, i32
  }
  func.func @transform_4(%arg0: i32, %arg1: i32) -> (i32, i32) {
    %c0_i32 = arith.constant 0 : i32
    %c0_i32_0 = arith.constant 0 : i32
    return %arg0, %c0_i32 : i32, i32
  }
}

module attributes {stable_mosaic.version = 11 : i64} {
  func.func @propagate_plain_kernel(%arg0: i32, %arg1: i32, %arg2: memref<256x256xbf16, #tpu.memory_space<vmem>>, %arg3: memref<256x128xbf16, #tpu.memory_space<vmem>>, %arg4: memref<1x128xf32, #tpu.memory_space<vmem>>, %arg5: memref<256x128xf32, #tpu.memory_space<vmem>>, %arg6: memref<256x128xf32, #tpu.memory_space<vmem>>) attributes {dimension_semantics = [#tpu.dimension_semantics<parallel>, #tpu.dimension_semantics<arbitrary>], iteration_bounds = array<i64: 1, 1>, scalar_prefetch = 0 : i64, scratch_operands = 1 : i64, tpu.core_type = #tpu.core_type<tc>, window_params = [{transform_indices = @transform_0, window_bounds = array<i64: 256, 256>}, {transform_indices = @transform_1, window_bounds = array<i64: 256, 128>}, {pipeline_mode = #tpu.pipeline_mode<synchronous>, transform_indices = @transform_2, window_bounds = array<i64: 1, 128>}, {transform_indices = @transform_3, window_bounds = array<i64: 256, 128>}]} {
    %c0_i32 = arith.constant 0 : i32
    %0 = arith.cmpi eq, %arg1, %c0_i32 : i32
    %1 = arith.extui %0 : i1 to i32
    %c0_i32_0 = arith.constant 0 : i32
    %2 = arith.cmpi ne, %1, %c0_i32_0 : i32
    scf.if %2 {
      %cst_10 = arith.constant 0.000000e+00 : f32
      %12 = vector.broadcast %cst_10 : f32 to vector<256x128xf32>
      %c0_11 = arith.constant 0 : index
      %c0_12 = arith.constant 0 : index
      %13 = vector.load %arg6[%c0_11, %c0_12] : memref<256x128xf32, #tpu.memory_space<vmem>>, vector<256x128xf32>
      tpu.vector_store %arg6[%c0_11, %c0_12], %12 {strides = array<i32>} : memref<256x128xf32, #tpu.memory_space<vmem>>, vector<256x128xf32>,
    } else {
    }
    %c0 = arith.constant 0 : index
    %c0_1 = arith.constant 0 : index
    %3 = vector.load %arg6[%c0, %c0_1] : memref<256x128xf32, #tpu.memory_space<vmem>>, vector<256x128xf32>
    %c0_2 = arith.constant 0 : index
    %c0_3 = arith.constant 0 : index
    %4 = vector.load %arg2[%c0_2, %c0_3] : memref<256x256xbf16, #tpu.memory_space<vmem>>, vector<256x256xbf16>
    %c0_4 = arith.constant 0 : index
    %c0_5 = arith.constant 0 : index
    %5 = vector.load %arg3[%c0_4, %c0_5] : memref<256x128xbf16, #tpu.memory_space<vmem>>, vector<256x128xbf16>
    %cst = arith.constant dense<0.000000e+00> : vector<256x128xf32>
    %6 = tpu.matmul %4, %5, %cst {dimension_numbers = #tpu.dot_dimension_numbers<[1], [0], [0], [1], [0, 0, 1, 1], [], []>} : vector<256x256xbf16>, vector<256x128xbf16>, vector<256x128xf32> -> vector<256x128xf32>
    %7 = arith.addf %3, %6 : vector<256x128xf32>
    %c0_6 = arith.constant 0 : index
    %c0_7 = arith.constant 0 : index
    %8 = vector.load %arg6[%c0_6, %c0_7] : memref<256x128xf32, #tpu.memory_space<vmem>>, vector<256x128xf32>
    tpu.vector_store %arg6[%c0_6, %c0_7], %7 {strides = array<i32>} : memref<256x128xf32, #tpu.memory_space<vmem>>, vector<256x128xf32>,
    %c0_i32_8 = arith.constant 0 : i32
    %9 = arith.cmpi eq, %arg1, %c0_i32_8 : i32
    %10 = arith.extui %9 : i1 to i32
    %c0_i32_9 = arith.constant 0 : i32
    %11 = arith.cmpi ne, %10, %c0_i32_9 : i32
    scf.if %11 {
      %c0_10 = arith.constant 0 : index
      %c0_11 = arith.constant 0 : index
      %12 = vector.load %arg6[%c0_10, %c0_11] : memref<256x128xf32, #tpu.memory_space<vmem>>, vector<256x128xf32>
      %c0_12 = arith.constant 0 : index
      %c0_13 = arith.constant 0 : index
      %13 = vector.load %arg4[%c0_12, %c0_13] : memref<1x128xf32, #tpu.memory_space<vmem>>, vector<1x128xf32>
      %14 = vector.broadcast %13 : vector<1x128xf32> to vector<256x128xf32>
      %15 = arith.addf %12, %14 : vector<256x128xf32>
      %c0_14 = arith.constant 0 : index
      %c0_15 = arith.constant 0 : index
      %16 = vector.load %arg5[%c0_14, %c0_15] : memref<256x128xf32, #tpu.memory_space<vmem>>, vector<256x128xf32>
      tpu.vector_store %arg5[%c0_14, %c0_15], %15 {strides = array<i32>} : memref<256x128xf32, #tpu.memory_space<vmem>>, vector<256x128xf32>,
    } else {
    }
    return
  }
  func.func @transform_0(%arg0: i32, %arg1: i32) -> (i32, i32) {
    %c0_i32 = arith.constant 0 : i32
    return %arg0, %arg1 : i32, i32
  }
  func.func @transform_1(%arg0: i32, %arg1: i32) -> (i32, i32) {
    %c0_i32 = arith.constant 0 : i32
    %c0_i32_0 = arith.constant 0 : i32
    return %arg1, %c0_i32 : i32, i32
  }
  func.func @transform_2(%arg0: i32, %arg1: i32) -> (i32, i32) {
    %c0_i32 = arith.constant 0 : i32
    %c0_i32_0 = arith.constant 0 : i32
    %c0_i32_1 = arith.constant 0 : i32
    return %c0_i32, %c0_i32_0 : i32, i32
  }
  func.func @transform_3(%arg0: i32, %arg1: i32) -> (i32, i32) {
    %c0_i32 = arith.constant 0 : i32
    %c0_i32_0 = arith.constant 0 : i32
    return %arg0, %c0_i32 : i32, i32
  }
}

</mosaic_0001>

<bundles_post_ra>
// kernel: mul.1
= control target key start
LH: loop header
LB: loop body
LE: loop exit
PB: predicated region body
PF: predicated region fallthrough
CT: control target
= control target key end

     0   :  { %s34_s0 = inlined_call_operand.vmem [shape: f32[800], index: 0, kind: input, shape index: {}]   ;;  %s35_s1 = inlined_call_operand.vmem [shape: f32[800], index: 1, kind: input, shape index: {}]   ;;  %s36_s2 = inlined_call_operand.vmem [shape: f32[800], index: 2, kind: output, shape index: {}]  }
   0x1   :  { %v3_v0 = vld [vmem:[%s34_s0] sm:$0x7f] }
   0x2   :  { %v4_v1 = vld [vmem:[%s35_s1] sm:$0x7f] }
   0x3   :  { %v7_v2 = vmul.f32 %v4_v1, %v3_v0 }
   0x5   :  { %9 = vst [vmem:[%s36_s2] sm:$0xff] %v7_v2 }

// kernel: gae_encoder.3
= control target key start
LH: loop header
LB: loop body
LE: loop exit
PB: predicated region body
PF: predicated region fallthrough
CT: control target
= control target key end

     0   :  { %s734_s1 = inlined_call_operand.vmem [shape: bf16[128,128], index: 1, kind: input, shape index: {}]   ;;  %s735_s0 = inlined_call_operand.vmem [shape: bf16[256,128], index: 0, kind: input, shape index: {}]   ;;  %s736_s2 = inlined_call_operand.vmem [shape: bf16[256,128], index: 2, kind: output, shape index: {}]  }
   0x1   :  { %v479_v0 = vld [vmem:[%s734_s1 + $0x38] sm:$0xff]  ;;  %v478_v1 = vld [vmem:[%s734_s1 + $0x30] sm:$0xff]  ;;  %v477_v2 = vld [vmem:[%s734_s1 + $0x28] sm:$0xff] }
   0x2   :  { %203 = vmatpush.bf16.msra.mxu0 %v479_v0  ;;  %575 = vmatpush.bf16.msra.mxu1 %v479_v0  ;;  %v476_v3 = vld [vmem:[%s734_s1 + $0x20] sm:$0xff]  ;;  %v475_v4 = vld [vmem:[%s734_s1 + $0x18] sm:$0xff]  ;;  %v474_v5 = vld [vmem:[%s734_s1 + $0x10] sm:$0xff] }
   0x3   :  { %576 = vmatpush.bf16.msra.mxu2 %v479_v0  ;;  %577 = vmatpush.bf16.msra.mxu3 %v479_v0  ;;  %v473_v6 = vld [vmem:[%s734_s1 + $0x8] sm:$0xff]  ;;  %v472_v7 = vld [vmem:[%s734_s1] sm:$0xff]  ;;  %v458_v16 = vld [vmem:[%s735_s0 + $0x10] sm:$0xff] }
   0x4   :  { %v456_v8 = vld [vmem:[%s735_s0] sm:$0xff]  ;;  %v457_v12 = vld [vmem:[%s735_s0 + $0x8] sm:$0xff]  ;;  %v462_v17 = vld [vmem:[%s735_s0 + $0x30] sm:$0xff] }
   0x5   :  { %v460_v9 = vld [vmem:[%s735_s0 + $0x20] sm:$0xff]  ;;  %v461_v13 = vld [vmem:[%s735_s0 + $0x28] sm:$0xff]  ;;  %v466_v18 = vld [vmem:[%s735_s0 + $0x50] sm:$0xff] }
   0x6   :  { %204 = vmatpush.bf16.msra.mxu0 %v478_v1  ;;  %578 = vmatpush.bf16.msra.mxu1 %v478_v1  ;;  %v464_v10 = vld [vmem:[%s735_s0 + $0x40] sm:$0xff]  ;;  %v465_v14 = vld [vmem:[%s735_s0 + $0x48] sm:$0xff]  ;;  %v470_v19 = vld [vmem:[%s735_s0 + $0x70] sm:$0xff] }
   0x7   :  { %579 = vmatpush.bf16.msra.mxu2 %v478_v1  ;;  %580 = vmatpush.bf16.msra.mxu3 %v478_v1  ;;  %v468_v11 = vld [vmem:[%s735_s0 + $0x60] sm:$0xff]  ;;  %v469_v15 = vld [vmem:[%s735_s0 + $0x68] sm:$0xff]  ;;  %v459_v20 = vld [vmem:[%s735_s0 + $0x18] sm:$0xff] }
   0x8   :  { %v463_v21 = vld [vmem:[%s735_s0 + $0x38] sm:$0xff] }
   0x9   :  { %v467_v22 = vld [vmem:[%s735_s0 + $0x58] sm:$0xff] }
   0xa   :  { %205 = vmatpush.bf16.msra.mxu0 %v477_v2  ;;  %581 = vmatpush.bf16.msra.mxu1 %v477_v2  ;;  %v471_v23 = vld [vmem:[%s735_s0 + $0x78] sm:$0xff] }
   0xb   :  { %582 = vmatpush.bf16.msra.mxu2 %v477_v2  ;;  %583 = vmatpush.bf16.msra.mxu3 %v477_v2 }
   0xe   :  { %206 = vmatpush.bf16.msra.mxu0 %v476_v3  ;;  %584 = vmatpush.bf16.msra.mxu1 %v476_v3 }
   0xf   :  { %585 = vmatpush.bf16.msra.mxu2 %v476_v3  ;;  %586 = vmatpush.bf16.msra.mxu3 %v476_v3 }
  0x12   :  { %207 = vmatpush.bf16.msra.mxu0 %v475_v4  ;;  %587 = vmatpush.bf16.msra.mxu1 %v475_v4 }
  0x13   :  { %588 = vmatpush.bf16.msra.mxu2 %v475_v4  ;;  %589 = vmatpush.bf16.msra.mxu3 %v475_v4 }
  0x16   :  { %208 = vmatpush.bf16.msra.mxu0 %v474_v5  ;;  %590 = vmatpush.bf16.msra.mxu1 %v474_v5 }
  0x17   :  { %591 = vmatpush.bf16.msra.mxu2 %v474_v5  ;;  %592 = vmatpush.bf16.msra.mxu3 %v474_v5 }
  0x1a   :  { %209 = vmatpush.bf16.msra.mxu0 %v473_v6  ;;  %593 = vmatpush.bf16.msra.mxu1 %v473_v6 }
  0x1b   :  { %594 = vmatpush.bf16.msra.mxu2 %v473_v6  ;;  %595 = vmatpush.bf16.msra.mxu3 %v473_v6 }
  0x1e   :  { %210 = vmatpush.bf16.msra.mxu0 %v472_v7  ;;  %596 = vmatpush.bf16.msra.mxu1 %v472_v7 }
  0x1f   :  { %597 = vmatpush.bf16.msra.mxu2 %v472_v7  ;;  %598 = vmatpush.bf16.msra.mxu3 %v472_v7 }
  0x21   :  { %211 = vmatmul.bf16.vlgmr.msra.gmra.mxu0 %v456_v8  ;;  %231 = vmatmul.bf16.vlgmr.msra.gmra.mxu1 %v460_v9 }
  0x22   :  { %251 = vmatmul.bf16.vlgmr.msra.gmra.mxu2 %v464_v10  ;;  %271 = vmatmul.bf16.vlgmr.msra.gmra.mxu3 %v468_v11 }
  0x31   :  { %216 = vmatmul.bf16.gmra.mxu0 %v457_v12  ;;  %236 = vmatmul.bf16.gmra.mxu1 %v461_v13 }
  0x32   :  { %256 = vmatmul.bf16.gmra.mxu2 %v465_v14  ;;  %276 = vmatmul.bf16.gmra.mxu3 %v469_v15 }
  0x41   :  { %221 = vmatmul.bf16.gmra.mxu0 %v458_v16  ;;  %241 = vmatmul.bf16.gmra.mxu1 %v462_v17 }
  0x42   :  { %261 = vmatmul.bf16.gmra.mxu2 %v466_v18  ;;  %281 = vmatmul.bf16.gmra.mxu3 %v470_v19 }
  0x51   :  { %226 = vmatmul.bf16.gmra.mxu0 %v459_v20  ;;  %246 = vmatmul.bf16.gmra.mxu1 %v463_v21 }
  0x52   :  { %266 = vmatmul.bf16.gmra.mxu2 %v467_v22  ;;  %286 = vmatmul.bf16.gmra.mxu3 %v471_v23 }
  0x9e   :  { %v212_v24 = vpop.f32.mrf.mxu0  ;;  %v232_v25 = vpop.f32.mrf.mxu1 }
  0xa5   :  { %v252_v26 = vpop.f32.mrf.mxu2  ;;  %v272_v27 = vpop.f32.mrf.mxu3 }
  0xa6   :  { %v214_v28 = vpop.f32.mrf.mxu0  ;;  %v234_v29 = vpop.f32.mrf.mxu1 }
  0xa7   :  { %v483_v30 = vpack.c.bf16 %v214_v28, %v212_v24  ;;  %v503_v31 = vpack.c.bf16 %v234_v29, %v232_v25 }
  0xa9   :  { %484 = vst [vmem:[%s736_s2] sm:$0xff] %v483_v30  }
  0xaa   :  { %563 = vst [vmem:[%s736_s2 + $0x20] sm:$0xff] %v503_v31  }
  0xad   :  { %v254_v32 = vpop.f32.mrf.mxu2  ;;  %v274_v33 = vpop.f32.mrf.mxu3 }
  0xae   :  { %v523_v34 = vpack.c.bf16 %v254_v32, %v252_v26  ;;  %v543_v35 = vpack.c.bf16 %v274_v33, %v272_v27  ;;  %v217_v36 = vpop.f32.mrf.mxu0  ;;  %v237_v37 = vpop.f32.mrf.mxu1 }
  0xb0   :  { %567 = vst [vmem:[%s736_s2 + $0x40] sm:$0xff] %v523_v34  }
  0xb1   :  { %571 = vst [vmem:[%s736_s2 + $0x60] sm:$0xff] %v543_v35  }
  0xb5   :  { %v257_v38 = vpop.f32.mrf.mxu2  ;;  %v277_v39 = vpop.f32.mrf.mxu3 }
  0xb6   :  { %v219_v40 = vpop.f32.mrf.mxu0  ;;  %v239_v41 = vpop.f32.mrf.mxu1 }
  0xb7   :  { %v488_v42 = vpack.c.bf16 %v219_v40, %v217_v36  ;;  %v508_v43 = vpack.c.bf16 %v239_v41, %v237_v37 }
  0xb9   :  { %560 = vst [vmem:[%s736_s2 + $0x8] sm:$0xff] %v488_v42  }
  0xba   :  { %564 = vst [vmem:[%s736_s2 + $0x28] sm:$0xff] %v508_v43  }
  0xbd   :  { %v259_v44 = vpop.f32.mrf.mxu2  ;;  %v279_v45 = vpop.f32.mrf.mxu3 }
  0xbe   :  { %v528_v46 = vpack.c.bf16 %v259_v44, %v257_v38  ;;  %v548_v47 = vpack.c.bf16 %v279_v45, %v277_v39  ;;  %v222_v48 = vpop.f32.mrf.mxu0  ;;  %v242_v49 = vpop.f32.mrf.mxu1 }
  0xc0   :  { %568 = vst [vmem:[%s736_s2 + $0x48] sm:$0xff] %v528_v46  }
  0xc1   :  { %572 = vst [vmem:[%s736_s2 + $0x68] sm:$0xff] %v548_v47  }
  0xc5   :  { %v262_v50 = vpop.f32.mrf.mxu2  ;;  %v282_v51 = vpop.f32.mrf.mxu3 }
  0xc6   :  { %v224_v52 = vpop.f32.mrf.mxu0  ;;  %v244_v53 = vpop.f32.mrf.mxu1 }
  0xc7   :  { %v493_v54 = vpack.c.bf16 %v224_v52, %v222_v48  ;;  %v513_v55 = vpack.c.bf16 %v244_v53, %v242_v49 }
  0xc9   :  { %561 = vst [vmem:[%s736_s2 + $0x10] sm:$0xff] %v493_v54  }
  0xca   :  { %565 = vst [vmem:[%s736_s2 + $0x30] sm:$0xff] %v513_v55  }
  0xcd   :  { %v264_v56 = vpop.f32.mrf.mxu2  ;;  %v284_v57 = vpop.f32.mrf.mxu3 }
  0xce   :  { %v533_v58 = vpack.c.bf16 %v264_v56, %v262_v50  ;;  %v553_v59 = vpack.c.bf16 %v284_v57, %v282_v51  ;;  %v227_v60 = vpop.f32.mrf.mxu0  ;;  %v247_v61 = vpop.f32.mrf.mxu1 }
  0xd0   :  { %569 = vst [vmem:[%s736_s2 + $0x50] sm:$0xff] %v533_v58  }
  0xd1   :  { %573 = vst [vmem:[%s736_s2 + $0x70] sm:$0xff] %v553_v59  }
  0xd5   :  { %v267_v62 = vpop.f32.mrf.mxu2  ;;  %v287_v63 = vpop.f32.mrf.mxu3 }
  0xd6   :  { %v229_v0 = vpop.f32.mrf.mxu0  ;;  %v249_v1 = vpop.f32.mrf.mxu1 }
  0xd7   :  { %v498_v2 = vpack.c.bf16 %v229_v0, %v227_v60  ;;  %v518_v3 = vpack.c.bf16 %v249_v1, %v247_v61 }
  0xd9   :  { %562 = vst [vmem:[%s736_s2 + $0x18] sm:$0xff] %v498_v2  }
  0xda   :  { %566 = vst [vmem:[%s736_s2 + $0x38] sm:$0xff] %v518_v3  }
  0xdd   :  { %v269_v4 = vpop.f32.mrf.mxu2  ;;  %v289_v5 = vpop.f32.mrf.mxu3 }
  0xde   :  { %v538_v6 = vpack.c.bf16 %v269_v4, %v267_v62  ;;  %v558_v7 = vpack.c.bf16 %v289_v5, %v287_v63 }
  0xe0   :  { %570 = vst [vmem:[%s736_s2 + $0x58] sm:$0xff] %v538_v6  }
  0xe1   :  { %574 = vst [vmem:[%s736_s2 + $0x78] sm:$0xff] %v558_v7  }

// kernel: gae_encoder.4
= control target key start
LH: loop header
LB: loop body
LE: loop exit
PB: predicated region body
PF: predicated region fallthrough
CT: control target
= control target key end

     0   :  { %s1785_s1 = inlined_call_operand.vmem [shape: bf16[256,128], index: 1, kind: input, shape index: {}]   ;;  %s1786_s0 = inlined_call_operand.vmem [shape: bf16[256,256], index: 0, kind: input, shape index: {}]   ;;  %s1787_s2 = inlined_call_operand.vmem [shape: f32[1,128], index: 2, kind: input, shape index: {}]   ;;  %s1788_s3 = inlined_call_operand.vmem [shape: bf16[128,128], index: 3, kind: input, shape index: {}]   ;;  %s1789_s4 = inlined_call_operand.vmem [shape: bf16[256,128], index: 4, kind: output, shape index: {}]  }
   0x1   :  { %v1250_v0 = vld [vmem:[%s1785_s1 + $0x38] sm:$0xff]  ;;  %v1249_v2 = vld [vmem:[%s1785_s1 + $0x30] sm:$0xff]  ;;  %v1248_v4 = vld [vmem:[%s1785_s1 + $0x28] sm:$0xff] }
   0x2   :  { %v1258_v1 = vld [vmem:[%s1785_s1 + $0x78] sm:$0xff]  ;;  %405 = vmatpush.bf16.msra.mxu0 %v1250_v0  ;;  %1362 = vmatpush.bf16.msra.mxu3 %v1250_v0  ;;  %v1257_v3 = vld [vmem:[%s1785_s1 + $0x70] sm:$0xff]  ;;  %v1256_v5 = vld [vmem:[%s1785_s1 + $0x68] sm:$0xff] }
   0x3   :  { %494 = vmatpush.bf16.msra.mxu1 %v1258_v1  ;;  %v1247_v6 = vld [vmem:[%s1785_s1 + $0x20] sm:$0xff]  ;;  %v1246_v8 = vld [vmem:[%s1785_s1 + $0x18] sm:$0xff]  ;;  %v1245_v10 = vld [vmem:[%s1785_s1 + $0x10] sm:$0xff] }
   0x4   :  { %v1255_v7 = vld [vmem:[%s1785_s1 + $0x60] sm:$0xff]  ;;  %v1254_v9 = vld [vmem:[%s1785_s1 + $0x58] sm:$0xff]  ;;  %v1253_v11 = vld [vmem:[%s1785_s1 + $0x50] sm:$0xff] }
   0x5   :  { %v1244_v12 = vld [vmem:[%s1785_s1 + $0x8] sm:$0xff]  ;;  %v1243_v14 = vld [vmem:[%s1785_s1] sm:$0xff]  ;;  %v997_v25 = vld [vmem:[%s1786_s0 + $0x10] sm:$0xf] }
   0x6   :  { %406 = vmatpush.bf16.msra.mxu0 %v1249_v2  ;;  %1363 = vmatpush.bf16.msra.mxu3 %v1249_v2  ;;  %v1252_v13 = vld [vmem:[%s1785_s1 + $0x48] sm:$0xff]  ;;  %v989_v15 = vld [vmem:[%s1786_s0] sm:$0xf]  ;;  %v1211_v20 = vld [vmem:[%s1786_s0 + $0x4] sm:$0xf] }
   0x7   :  { %495 = vmatpush.bf16.msra.mxu1 %v1257_v3  ;;  %v1212_v16 = vld [vmem:[%s1786_s0 + $0x4] sm:$0xf0]  ;;  %v1085_v17 = vld [vmem:[%s1786_s0 + $0xc0] sm:$0xf]  ;;  %v991_v21 = vld [vmem:[%s1786_s0 + $0x8] sm:$0xf0] }
   0x8   :  { %v1236_v18 = vld [vmem:[%s1786_s0 + $0xc4] sm:$0xf0]  ;;  %v1251_v19 = vld [vmem:[%s1785_s1 + $0x40] sm:$0xff]  ;;  %v990_v22 = vor.u32 %v1212_v16, %v989_v15  ;;  %v994_v24 = vor.u32 %v1211_v20, %v991_v21  ;;  %v1214_v26 = vld [vmem:[%s1786_s0 + $0x14] sm:$0xf0] }
   0x9   :  { %v1086_v23 = vor.u32 %v1236_v18, %v1085_v17  ;;  %v1093_v27 = vld [vmem:[%s1786_s0 + $0xd0] sm:$0xf]  ;;  %v1238_v28 = vld [vmem:[%s1786_s0 + $0xd4] sm:$0xf0]  ;;  %v1213_v29 = vld [vmem:[%s1786_s0 + $0x14] sm:$0xf]  ;;  %v998_v31 = vor.u32 %v1214_v26, %v997_v25 }
   0xa   :  { %407 = vmatpush.bf16.msra.mxu0 %v1248_v4  ;;  %1364 = vmatpush.bf16.msra.mxu3 %v1248_v4  ;;  %v999_v30 = vld [vmem:[%s1786_s0 + $0x18] sm:$0xf0]  ;;  %v1094_v32 = vor.u32 %v1238_v28, %v1093_v27  ;;  %v1005_v34 = vld [vmem:[%s1786_s0 + $0x20] sm:$0xf]  ;;  %v1216_v35 = vld [vmem:[%s1786_s0 + $0x24] sm:$0xf0] }
   0xb   :  { %496 = vmatpush.bf16.msra.mxu1 %v1256_v5  ;;  %v1002_v33 = vor.u32 %v1213_v29, %v999_v30  ;;  %v1101_v36 = vld [vmem:[%s1786_s0 + $0xe0] sm:$0xf]  ;;  %v1240_v37 = vld [vmem:[%s1786_s0 + $0xe4] sm:$0xf0]  ;;  %v1215_v38 = vld [vmem:[%s1786_s0 + $0x24] sm:$0xf]  ;;  %v1006_v40 = vor.u32 %v1216_v35, %v1005_v34 }
   0xc   :  { %v1007_v39 = vld [vmem:[%s1786_s0 + $0x28] sm:$0xf0]  ;;  %v1102_v41 = vor.u32 %v1240_v37, %v1101_v36  ;;  %v1013_v43 = vld [vmem:[%s1786_s0 + $0x30] sm:$0xf]  ;;  %v1218_v44 = vld [vmem:[%s1786_s0 + $0x34] sm:$0xf0] }
   0xd   :  { %v1010_v42 = vor.u32 %v1215_v38, %v1007_v39  ;;  %v1109_v45 = vld [vmem:[%s1786_s0 + $0xf0] sm:$0xf]  ;;  %v1242_v46 = vld [vmem:[%s1786_s0 + $0xf4] sm:$0xf0]  ;;  %v1217_v47 = vld [vmem:[%s1786_s0 + $0x34] sm:$0xf]  ;;  %v1014_v49 = vor.u32 %v1218_v44, %v1013_v43 }
   0xe   :  { %408 = vmatpush.bf16.msra.mxu0 %v1247_v6  ;;  %1365 = vmatpush.bf16.msra.mxu3 %v1247_v6  ;;  %v1015_v48 = vld [vmem:[%s1786_s0 + $0x38] sm:$0xf0]  ;;  %v1110_v50 = vor.u32 %v1242_v46, %v1109_v45  ;;  %v1021_v52 = vld [vmem:[%s1786_s0 + $0x40] sm:$0xf]  ;;  %v1220_v53 = vld [vmem:[%s1786_s0 + $0x44] sm:$0xf0] }
   0xf   :  { %497 = vmatpush.bf16.msra.mxu1 %v1255_v7  ;;  %v1018_v51 = vor.u32 %v1217_v47, %v1015_v48  ;;  %v1235_v54 = vld [vmem:[%s1786_s0 + $0xc4] sm:$0xf]  ;;  %v1087_v55 = vld [vmem:[%s1786_s0 + $0xc8] sm:$0xf0]  ;;  %v1022_v58 = vor.u32 %v1220_v53, %v1021_v52  ;;  %v1266_v61 = vld [vmem:[%s1788_s3 + $0x38] sm:$0xff] }
  0x10   :  { %v1219_v56 = vld [vmem:[%s1786_s0 + $0x44] sm:$0xf]  ;;  %v1023_v57 = vld [vmem:[%s1786_s0 + $0x48] sm:$0xf0]  ;;  %v1090_v59 = vor.u32 %v1235_v54, %v1087_v55  ;;  %830 = vmatpush.bf16.msra.mxu2 %v1266_v61  ;;  %v1029_v62 = vld [vmem:[%s1786_s0 + $0x50] sm:$0xf] }
  0x11   :  { %v1026_v60 = vor.u32 %v1219_v56, %v1023_v57  ;;  %v1222_v63 = vld [vmem:[%s1786_s0 + $0x54] sm:$0xf0]  ;;  %v1237_v0 = vld [vmem:[%s1786_s0 + $0xd4] sm:$0xf]  ;;  %v1039_v15 = vld [vmem:[%s1786_s0 + $0x68] sm:$0xf0] }
  0x12   :  { %409 = vmatpush.bf16.msra.mxu0 %v1246_v8  ;;  %1366 = vmatpush.bf16.msra.mxu3 %v1246_v8  ;;  %v1221_v2 = vld [vmem:[%s1786_s0 + $0x54] sm:$0xf]  ;;  %v1030_v4 = vor.u32 %v1222_v63, %v1029_v62  ;;  %v1264_v8 = vld [vmem:[%s1788_s3 + $0x28] sm:$0xff]  ;;  %v1111_v25 = vld [vmem:[%s1786_s0 + $0xf8] sm:$0xf0] }
  0x13   :  { %498 = vmatpush.bf16.msra.mxu1 %v1254_v9  ;;  %v1261_v20 = vld [vmem:[%s1788_s3 + $0x10] sm:$0xff]  ;;  %v1260_v21 = vld [vmem:[%s1788_s3 + $0x8] sm:$0xff]  ;;  %v1047_v27 = vld [vmem:[%s1786_s0 + $0x78] sm:$0xf0] }
  0x14   :  { %v1225_v26 = vld [vmem:[%s1786_s0 + $0x74] sm:$0xf]  ;;  %v1259_v28 = vld [vmem:[%s1788_s3] sm:$0xff]  ;;  %v1055_v35 = vld [vmem:[%s1786_s0 + $0x88] sm:$0xf0] }
  0x15   :  { %v1227_v34 = vld [vmem:[%s1786_s0 + $0x84] sm:$0xf]  ;;  %v1061_v48 = vld [vmem:[%s1786_s0 + $0x90] sm:$0xf] }
  0x16   :  { %410 = vmatpush.bf16.msra.mxu0 %v1245_v10  ;;  %1367 = vmatpush.bf16.msra.mxu3 %v1245_v10  ;;  %v1037_v10 = vld [vmem:[%s1786_s0 + $0x60] sm:$0xf]  ;;  %v1058_v38 = vor.u32 %v1227_v34, %v1055_v35 }
  0x17   :  { %499 = vmatpush.bf16.msra.mxu1 %v1253_v11 }
  0x1a   :  { %411 = vmatpush.bf16.msra.mxu0 %v1244_v12  ;;  %1368 = vmatpush.bf16.msra.mxu3 %v1244_v12  ;;  %v1239_v12 = vld [vmem:[%s1786_s0 + $0xe4] sm:$0xf] }
  0x1b   :  { %500 = vmatpush.bf16.msra.mxu1 %v1252_v13 }
  0x1e   :  { %412 = vmatpush.bf16.msra.mxu0 %v1243_v14  ;;  %1369 = vmatpush.bf16.msra.mxu3 %v1243_v14  ;;  %v1223_v14 = vld [vmem:[%s1786_s0 + $0x64] sm:$0xf] }
  0x1f   :  { %501 = vmatpush.bf16.msra.mxu1 %v1251_v19  ;;  %v1042_v18 = vor.u32 %v1223_v14, %v1039_v15 }
  0x21   :  { %413 = vmatmul.bf16.vlgmr.msra.gmra.mxu0 %v990_v22  ;;  %473 = vmatmul.bf16.vlgmr.msra.gmra.mxu3 %v1086_v23  ;;  %v1045_v22 = vld [vmem:[%s1786_s0 + $0x70] sm:$0xf]  ;;  %v1226_v23 = vld [vmem:[%s1786_s0 + $0x74] sm:$0xf0] }
  0x22   :  { %1370 = vmatpush.bf16.msrb.mxu3 %v1258_v1  ;;  %502 = vmatmul.bf16.vlgmr.msra.gmra.mxu1 %v994_v24  ;;  %v1095_v1 = vld [vmem:[%s1786_s0 + $0xd8] sm:$0xf0]  ;;  %v1241_v24 = vld [vmem:[%s1786_s0 + $0xf4] sm:$0xf]  ;;  %v1046_v29 = vor.u32 %v1226_v23, %v1045_v22  ;;  %v1077_v22 = vld [vmem:[%s1786_s0 + $0xb0] sm:$0xf] }
  0x23   :  { %v1114_v30 = vor.u32 %v1241_v24, %v1111_v25  ;;  %v1234_v23 = vld [vmem:[%s1786_s0 + $0xb4] sm:$0xf0]  ;;  %v1233_v24 = vld [vmem:[%s1786_s0 + $0xb4] sm:$0xf]  ;;  %v1079_v25 = vld [vmem:[%s1786_s0 + $0xb8] sm:$0xf0] }
  0x26   :  { %1371 = vmatpush.bf16.msrb.mxu3 %v1257_v3  ;;  %v1031_v3 = vld [vmem:[%s1786_s0 + $0x58] sm:$0xf0] }
  0x27   :  { %v1034_v6 = vor.u32 %v1221_v2, %v1031_v3  ;;  %v1069_v3 = vld [vmem:[%s1786_s0 + $0xa0] sm:$0xf] }
  0x2a   :  { %1372 = vmatpush.bf16.msrb.mxu3 %v1256_v5  ;;  %v1098_v5 = vor.u32 %v1237_v0, %v1095_v1 }
  0x2e   :  { %1373 = vmatpush.bf16.msrb.mxu3 %v1255_v7  ;;  %v1265_v7 = vld [vmem:[%s1788_s3 + $0x30] sm:$0xff] }
  0x2f   :  { %831 = vmatpush.bf16.msra.mxu2 %v1265_v7 }
  0x31   :  { %418 = vmatmul.bf16.gmra.mxu0 %v998_v31  ;;  %478 = vmatmul.bf16.gmra.mxu3 %v1094_v32  ;;  %v1050_v31 = vor.u32 %v1225_v26, %v1047_v27  ;;  %v1053_v32 = vld [vmem:[%s1786_s0 + $0x80] sm:$0xf] }
  0x32   :  { %1374 = vmatpush.bf16.msrb.mxu3 %v1254_v9  ;;  %507 = vmatmul.bf16.gmra.mxu1 %v1002_v33  ;;  %v1263_v9 = vld [vmem:[%s1788_s3 + $0x20] sm:$0xff]  ;;  %v1228_v33 = vld [vmem:[%s1786_s0 + $0x84] sm:$0xf0] }
  0x33   :  { %832 = vmatpush.bf16.msra.mxu2 %v1264_v8  ;;  %v1054_v36 = vor.u32 %v1228_v33, %v1053_v32  ;;  %v1082_v32 = vor.u32 %v1233_v24, %v1079_v25 }
  0x36   :  { %1375 = vmatpush.bf16.msrb.mxu3 %v1253_v11  ;;  %v1224_v11 = vld [vmem:[%s1786_s0 + $0x64] sm:$0xf0] }
  0x37   :  { %833 = vmatpush.bf16.msra.mxu2 %v1263_v9  ;;  %v1038_v16 = vor.u32 %v1224_v11, %v1037_v10 }
  0x3a   :  { %1376 = vmatpush.bf16.msrb.mxu3 %v1252_v13  ;;  %v1103_v13 = vld [vmem:[%s1786_s0 + $0xe8] sm:$0xf0] }
  0x3b   :  { %v1106_v17 = vor.u32 %v1239_v12, %v1103_v13 }
  0x3e   :  { %1377 = vmatpush.bf16.msrb.mxu3 %v1251_v19  ;;  %v1262_v19 = vld [vmem:[%s1788_s3 + $0x18] sm:$0xff] }
  0x3f   :  { %834 = vmatpush.bf16.msra.mxu2 %v1262_v19 }
  0x41   :  { %423 = vmatmul.bf16.gmra.mxu0 %v1006_v40  ;;  %483 = vmatmul.bf16.gmra.mxu3 %v1102_v41  ;;  %v1643_v41 = vld [vmem:[%s1787_s2] ss:$0 sm:$0xff] }
  0x42   :  { %512 = vmatmul.bf16.gmra.mxu1 %v1010_v42  ;;  %1378 = vmatpush.bf16.msra.mxu3 %v1266_v61 }
  0x43   :  { %835 = vmatpush.bf16.msra.mxu2 %v1261_v20 }
  0x46   :  { %1379 = vmatpush.bf16.msra.mxu3 %v1265_v7 }
  0x47   :  { %836 = vmatpush.bf16.msra.mxu2 %v1260_v21 }
  0x4a   :  { %1380 = vmatpush.bf16.msra.mxu3 %v1264_v8 }
  0x4b   :  { %837 = vmatpush.bf16.msra.mxu2 %v1259_v28 }
  0x4e   :  { %1381 = vmatpush.bf16.msra.mxu3 %v1263_v9 }
  0x51   :  { %428 = vmatmul.bf16.gmra.mxu0 %v1014_v49  ;;  %488 = vmatmul.bf16.gmra.mxu3 %v1110_v50  ;;  %v1230_v49 = vld [vmem:[%s1786_s0 + $0x94] sm:$0xf0]  ;;  %v1229_v50 = vld [vmem:[%s1786_s0 + $0x94] sm:$0xf] }
  0x52   :  { %517 = vmatmul.bf16.gmra.mxu1 %v1018_v51  ;;  %1382 = vmatpush.bf16.msra.mxu3 %v1262_v19  ;;  %v1063_v51 = vld [vmem:[%s1786_s0 + $0x98] sm:$0xf0]  ;;  %v1062_v55 = vor.u32 %v1230_v49, %v1061_v48 }
  0x56   :  { %1383 = vmatpush.bf16.msra.mxu3 %v1261_v20 }
  0x5a   :  { %1384 = vmatpush.bf16.msra.mxu3 %v1260_v21 }
  0x5e   :  { %1385 = vmatpush.bf16.msra.mxu3 %v1259_v28 }
  0x61   :  { %433 = vmatmul.bf16.gmra.mxu0 %v1022_v58  ;;  %562 = vmatmul.bf16.vlgmr.msrb.gmra.mxu3 %v1090_v59  ;;  %v1066_v58 = vor.u32 %v1229_v50, %v1063_v51 }
  0x62   :  { %522 = vmatmul.bf16.gmra.mxu1 %v1026_v60 }
  0x71   :  { %438 = vmatmul.bf16.gmra.mxu0 %v1030_v4  ;;  %567 = vmatmul.bf16.gmra.mxu3 %v1098_v5  ;;  %v1232_v4 = vld [vmem:[%s1786_s0 + $0xa4] sm:$0xf0]  ;;  %v1231_v5 = vld [vmem:[%s1786_s0 + $0xa4] sm:$0xf] }
  0x72   :  { %527 = vmatmul.bf16.gmra.mxu1 %v1034_v6  ;;  %v1071_v6 = vld [vmem:[%s1786_s0 + $0xa8] sm:$0xf0]  ;;  %v1070_v10 = vor.u32 %v1232_v4, %v1069_v3 }
  0x73   :  { %v1074_v13 = vor.u32 %v1231_v5, %v1071_v6 }
  0x81   :  { %443 = vmatmul.bf16.gmra.mxu0 %v1038_v16  ;;  %572 = vmatmul.bf16.gmra.mxu3 %v1106_v17 }
  0x82   :  { %532 = vmatmul.bf16.gmra.mxu1 %v1042_v18 }
  0x91   :  { %448 = vmatmul.bf16.gmra.mxu0 %v1046_v29  ;;  %577 = vmatmul.bf16.gmra.mxu3 %v1114_v30  ;;  %v1078_v29 = vor.u32 %v1234_v23, %v1077_v22 }
  0x92   :  { %537 = vmatmul.bf16.gmra.mxu1 %v1050_v31 }
  0x9e   :  { %v414_v37 = vpop.f32.mrf.mxu0 }
  0x9f   :  { %v503_v39 = vpop.f32.mrf.mxu1 }
  0xa0   :  { %v504_v40 = vadd.f32 %v503_v39, %v414_v37 }
  0xa1   :  { %453 = vmatmul.bf16.gmra.mxu0 %v1054_v36 }
  0xa2   :  { %542 = vmatmul.bf16.gmra.mxu1 %v1058_v38  ;;  %v686_v45 = vadd.f32 %v1643_v41, %v504_v40 }
  0xa4   :  { %v1645_v42 = vpop.f32.mrf.mxu3  ;;  %v718_v52 = vmax.f32 %v686_v45, 0.0 }
  0xa6   :  { %v416_v43 = vpop.f32.mrf.mxu0 }
  0xa7   :  { %v505_v44 = vpop.f32.mrf.mxu1 }
  0xa8   :  { %v506_v46 = vadd.f32 %v505_v44, %v416_v43 }
  0xaa   :  { %v687_v47 = vadd.f32 %v1643_v41, %v506_v46 }
  0xac   :  { %v719_v53 = vmax.f32 %v687_v47, 0.0  ;;  %v1661_v54 = vpop.f32.mrf.mxu3 }
  0xae   :  { %v419_v56 = vpop.f32.mrf.mxu0  ;;  %v750_v57 = vpack.c.bf16 %v719_v53, %v718_v52 }
  0xaf   :  { %v508_v59 = vpop.f32.mrf.mxu1 }
  0xb0   :  { %838 = vmatmul.bf16.vlgmr.msra.gmra.mxu2 %v750_v57  ;;  %v509_v60 = vadd.f32 %v508_v59, %v419_v56 }
  0xb1   :  { %458 = vmatmul.bf16.gmra.mxu0 %v1062_v55 }
  0xb2   :  { %547 = vmatmul.bf16.gmra.mxu1 %v1066_v58  ;;  %v688_v0 = vadd.f32 %v1643_v41, %v509_v60 }
  0xb4   :  { %v1663_v61 = vpop.f32.mrf.mxu3  ;;  %v720_v7 = vmax.f32 %v688_v0, 0.0 }
  0xb6   :  { %v421_v62 = vpop.f32.mrf.mxu0 }
  0xb7   :  { %v510_v63 = vpop.f32.mrf.mxu1 }
  0xb8   :  { %v511_v1 = vadd.f32 %v510_v63, %v421_v62 }
  0xba   :  { %v689_v2 = vadd.f32 %v1643_v41, %v511_v1 }
  0xbc   :  { %v721_v8 = vmax.f32 %v689_v2, 0.0  ;;  %v1679_v9 = vpop.f32.mrf.mxu3 }
  0xbe   :  { %v424_v11 = vpop.f32.mrf.mxu0  ;;  %v751_v12 = vpack.c.bf16 %v721_v8, %v720_v7 }
  0xbf   :  { %v513_v14 = vpop.f32.mrf.mxu1 }
  0xc0   :  { %843 = vmatmul.bf16.gmra.mxu2 %v751_v12  ;;  %v514_v15 = vadd.f32 %v513_v14, %v424_v11 }
  0xc1   :  { %463 = vmatmul.bf16.gmra.mxu0 %v1070_v10 }
  0xc2   :  { %552 = vmatmul.bf16.gmra.mxu1 %v1074_v13  ;;  %v690_v19 = vadd.f32 %v1643_v41, %v514_v15 }
  0xc4   :  { %v1681_v16 = vpop.f32.mrf.mxu3  ;;  %v722_v26 = vmax.f32 %v690_v19, 0.0 }
  0xc6   :  { %v426_v17 = vpop.f32.mrf.mxu0 }
  0xc7   :  { %v515_v18 = vpop.f32.mrf.mxu1 }
  0xc8   :  { %v516_v20 = vadd.f32 %v515_v18, %v426_v17 }
  0xca   :  { %v691_v21 = vadd.f32 %v1643_v41, %v516_v20 }
  0xcc   :  { %v723_v27 = vmax.f32 %v691_v21, 0.0  ;;  %v1697_v28 = vpop.f32.mrf.mxu3 }
  0xce   :  { %v429_v30 = vpop.f32.mrf.mxu0  ;;  %v752_v31 = vpack.c.bf16 %v723_v27, %v722_v26 }
  0xcf   :  { %v518_v33 = vpop.f32.mrf.mxu1 }
  0xd0   :  { %848 = vmatmul.bf16.gmra.mxu2 %v752_v31  ;;  %v519_v34 = vadd.f32 %v518_v33, %v429_v30 }
  0xd1   :  { %468 = vmatmul.bf16.gmra.mxu0 %v1078_v29 }
  0xd2   :  { %557 = vmatmul.bf16.gmra.mxu1 %v1082_v32  ;;  %v692_v38 = vadd.f32 %v1643_v41, %v519_v34 }
  0xd4   :  { %v1699_v35 = vpop.f32.mrf.mxu3  ;;  %v724_v43 = vmax.f32 %v692_v38, 0.0 }
  0xd6   :  { %v431_v36 = vpop.f32.mrf.mxu0 }
  0xd7   :  { %v520_v37 = vpop.f32.mrf.mxu1 }
  0xd8   :  { %v521_v39 = vadd.f32 %v520_v37, %v431_v36 }
  0xda   :  { %v693_v40 = vadd.f32 %v1643_v41, %v521_v39 }
  0xdc   :  { %v725_v44 = vmax.f32 %v693_v40, 0.0  ;;  %v1703_v45 = vpop.f32.mrf.mxu3 }
  0xde   :  { %v434_v46 = vpop.f32.mrf.mxu0  ;;  %v753_v47 = vpack.c.bf16 %v725_v44, %v724_v43 }
  0xdf   :  { %v523_v48 = vpop.f32.mrf.mxu1 }
  0xe0   :  { %853 = vmatmul.bf16.gmra.mxu2 %v753_v47  ;;  %v524_v49 = vadd.f32 %v523_v48, %v434_v46 }
  0xe2   :  { %v694_v53 = vadd.f32 %v1643_v41, %v524_v49 }
  0xe4   :  { %v563_v50 = vpop.f32.mrf.mxu3  ;;  %v726_v58 = vmax.f32 %v694_v53, 0.0 }
  0xe5   :  { %v564_v56 = vadd.f32 %v563_v50, %v1645_v42 }
  0xe6   :  { %v436_v51 = vpop.f32.mrf.mxu0 }
  0xe7   :  { %v525_v52 = vpop.f32.mrf.mxu1  ;;  %v710_v62 = vadd.f32 %v1643_v41, %v564_v56 }
  0xe8   :  { %v526_v55 = vadd.f32 %v525_v52, %v436_v51 }
  0xe9   :  { %v742_v4 = vmax.f32 %v710_v62, 0.0 }
  0xea   :  { %v695_v57 = vadd.f32 %v1643_v41, %v526_v55 }
  0xec   :  { %v727_v59 = vmax.f32 %v695_v57, 0.0  ;;  %v565_v60 = vpop.f32.mrf.mxu3 }
  0xed   :  { %v566_v63 = vadd.f32 %v565_v60, %v1661_v54 }
  0xee   :  { %v439_v0 = vpop.f32.mrf.mxu0  ;;  %v754_v1 = vpack.c.bf16 %v727_v59, %v726_v58 }
  0xef   :  { %v711_v2 = vadd.f32 %v1643_v41, %v566_v63  ;;  %v528_v3 = vpop.f32.mrf.mxu1 }
  0xf0   :  { %858 = vmatmul.bf16.gmra.mxu2 %v754_v1  ;;  %v529_v7 = vadd.f32 %v528_v3, %v439_v0 }
  0xf1   :  { %v743_v5 = vmax.f32 %v711_v2, 0.0 }
  0xf2   :  { %v696_v11 = vadd.f32 %v1643_v41, %v529_v7 }
  0xf3   :  { %v762_v6 = vpack.c.bf16 %v743_v5, %v742_v4 }
  0xf4   :  { %v568_v42 = vpop.f32.mrf.mxu3  ;;  %v728_v14 = vmax.f32 %v696_v11, 0.0 }
  0xf5   :  { %898 = vmatmul.bf16.vlgmr.msra.gmra.mxu3 %v762_v6  ;;  %v569_v13 = vadd.f32 %v568_v42, %v1663_v61 }
  0xf6   :  { %v441_v8 = vpop.f32.mrf.mxu0 }
  0xf7   :  { %v530_v10 = vpop.f32.mrf.mxu1  ;;  %v712_v18 = vadd.f32 %v1643_v41, %v569_v13 }
  0xf8   :  { %v531_v12 = vadd.f32 %v530_v10, %v441_v8 }
  0xf9   :  { %v744_v24 = vmax.f32 %v712_v18, 0.0 }
  0xfa   :  { %v697_v54 = vadd.f32 %v1643_v41, %v531_v12 }
  0xfc   :  { %v729_v15 = vmax.f32 %v697_v54, 0.0  ;;  %v570_v17 = vpop.f32.mrf.mxu3 }
  0xfd   :  { %v571_v19 = vadd.f32 %v570_v17, %v1679_v9 }
  0xfe   :  { %v444_v20 = vpop.f32.mrf.mxu0  ;;  %v755_v21 = vpack.c.bf16 %v729_v15, %v728_v14 }
  0xff   :  { %v713_v22 = vadd.f32 %v1643_v41, %v571_v19  ;;  %v533_v23 = vpop.f32.mrf.mxu1 }
 0x100   :  { %863 = vmatmul.bf16.gmra.mxu2 %v755_v21  ;;  %v534_v27 = vadd.f32 %v533_v23, %v444_v20 }
 0x101   :  { %v745_v25 = vmax.f32 %v713_v22, 0.0 }
 0x102   :  { %v698_v31 = vadd.f32 %v1643_v41, %v534_v27 }
 0x103   :  { %v763_v26 = vpack.c.bf16 %v745_v25, %v744_v24 }
 0x104   :  { %v573_v61 = vpop.f32.mrf.mxu3  ;;  %v730_v34 = vmax.f32 %v698_v31, 0.0 }
 0x105   :  { %903 = vmatmul.bf16.gmra.mxu3 %v763_v26  ;;  %v574_v33 = vadd.f32 %v573_v61, %v1681_v16 }
 0x106   :  { %v446_v29 = vpop.f32.mrf.mxu0 }
 0x107   :  { %v535_v30 = vpop.f32.mrf.mxu1  ;;  %v714_v38 = vadd.f32 %v1643_v41, %v574_v33 }
 0x108   :  { %v536_v32 = vadd.f32 %v535_v30, %v446_v29 }
 0x109   :  { %v746_v47 = vmax.f32 %v714_v38, 0.0 }
 0x10a   :  { %v699_v9 = vadd.f32 %v1643_v41, %v536_v32 }
 0x10c   :  { %v731_v36 = vmax.f32 %v699_v9, 0.0  ;;  %v575_v37 = vpop.f32.mrf.mxu3 }
 0x10d   :  { %v576_v39 = vadd.f32 %v575_v37, %v1697_v28 }
 0x10e   :  { %v449_v40 = vpop.f32.mrf.mxu0  ;;  %v756_v43 = vpack.c.bf16 %v731_v36, %v730_v34 }
 0x10f   :  { %v715_v44 = vadd.f32 %v1643_v41, %v576_v39  ;;  %v538_v46 = vpop.f32.mrf.mxu1 }
 0x110   :  { %868 = vmatmul.bf16.gmra.mxu2 %v756_v43  ;;  %v539_v50 = vadd.f32 %v538_v46, %v449_v40 }
 0x111   :  { %v747_v48 = vmax.f32 %v715_v44, 0.0 }
 0x112   :  { %v700_v53 = vadd.f32 %v1643_v41, %v539_v50 }
 0x113   :  { %v764_v49 = vpack.c.bf16 %v747_v48, %v746_v47 }
 0x114   :  { %v578_v16 = vpop.f32.mrf.mxu3  ;;  %v732_v57 = vmax.f32 %v700_v53, 0.0 }
 0x115   :  { %908 = vmatmul.bf16.gmra.mxu3 %v764_v49  ;;  %v579_v56 = vadd.f32 %v578_v16, %v1699_v35 }
 0x116   :  { %v451_v51 = vpop.f32.mrf.mxu0 }
 0x117   :  { %v540_v52 = vpop.f32.mrf.mxu1  ;;  %v716_v60 = vadd.f32 %v1643_v41, %v579_v56 }
 0x118   :  { %v541_v55 = vadd.f32 %v540_v52, %v451_v51 }
 0x119   :  { %v748_v3 = vmax.f32 %v716_v60, 0.0 }
 0x11a   :  { %v701_v28 = vadd.f32 %v1643_v41, %v541_v55 }
 0x11c   :  { %v733_v58 = vmax.f32 %v701_v28, 0.0  ;;  %v580_v59 = vpop.f32.mrf.mxu3 }
 0x11d   :  { %v581_v62 = vadd.f32 %v580_v59, %v1703_v45 }
 0x11e   :  { %v454_v63 = vpop.f32.mrf.mxu0  ;;  %v757_v0 = vpack.c.bf16 %v733_v58, %v732_v57 }
 0x11f   :  { %v717_v1 = vadd.f32 %v1643_v41, %v581_v62  ;;  %v543_v2 = vpop.f32.mrf.mxu1 }
 0x120   :  { %873 = vmatmul.bf16.gmra.mxu2 %v757_v0  ;;  %v544_v6 = vadd.f32 %v543_v2, %v454_v63 }
 0x121   :  { %v749_v4 = vmax.f32 %v717_v1, 0.0 }
 0x122   :  { %v702_v42 = vadd.f32 %v1643_v41, %v544_v6 }
 0x123   :  { %v765_v5 = vpack.c.bf16 %v749_v4, %v748_v3 }
 0x124   :  { %v734_v11 = vmax.f32 %v702_v42, 0.0 }
 0x125   :  { %913 = vmatmul.bf16.gmra.mxu3 %v765_v5 }
 0x126   :  { %v456_v35 = vpop.f32.mrf.mxu0 }
 0x127   :  { %v545_v7 = vpop.f32.mrf.mxu1 }
 0x128   :  { %v546_v8 = vadd.f32 %v545_v7, %v456_v35 }
 0x12a   :  { %v703_v10 = vadd.f32 %v1643_v41, %v546_v8 }
 0x12c   :  { %v735_v45 = vmax.f32 %v703_v10, 0.0 }
 0x12e   :  { %v459_v12 = vpop.f32.mrf.mxu0  ;;  %v758_v13 = vpack.c.bf16 %v735_v45, %v734_v11 }
 0x12f   :  { %v548_v54 = vpop.f32.mrf.mxu1 }
 0x130   :  { %878 = vmatmul.bf16.gmra.mxu2 %v758_v13  ;;  %v549_v15 = vadd.f32 %v548_v54, %v459_v12 }
 0x132   :  { %v704_v19 = vadd.f32 %v1643_v41, %v549_v15 }
 0x133   :  { %v839_v14 = vpop.f32.mrf.mxu2 }
 0x134   :  { %v736_v23 = vmax.f32 %v704_v19, 0.0 }
 0x136   :  { %v461_v17 = vpop.f32.mrf.mxu0 }
 0x137   :  { %v550_v18 = vpop.f32.mrf.mxu1 }
 0x138   :  { %v551_v20 = vadd.f32 %v550_v18, %v461_v17 }
 0x13a   :  { %v705_v21 = vadd.f32 %v1643_v41, %v551_v20 }
 0x13b   :  { %v841_v22 = vpop.f32.mrf.mxu2 }
 0x13c   :  { %v737_v24 = vmax.f32 %v705_v21, 0.0  ;;  %v1270_v25 = vpack.c.bf16 %v841_v22, %v839_v14 }
 0x13e   :  { %1271 = vst [vmem:[%s1789_s4] sm:$0xff] %v1270_v25   ;;  %v464_v26 = vpop.f32.mrf.mxu0  ;;  %v759_v27 = vpack.c.bf16 %v737_v24, %v736_v23 }
 0x13f   :  { %v553_v61 = vpop.f32.mrf.mxu1 }
 0x140   :  { %883 = vmatmul.bf16.gmra.mxu2 %v759_v27  ;;  %v554_v30 = vadd.f32 %v553_v61, %v464_v26 }
 0x142   :  { %v706_v33 = vadd.f32 %v1643_v41, %v554_v30 }
 0x143   :  { %v844_v29 = vpop.f32.mrf.mxu2 }
 0x144   :  { %v738_v37 = vmax.f32 %v706_v33, 0.0 }
 0x146   :  { %v466_v31 = vpop.f32.mrf.mxu0 }
 0x147   :  { %v555_v32 = vpop.f32.mrf.mxu1 }
 0x148   :  { %v556_v9 = vadd.f32 %v555_v32, %v466_v31 }
 0x14a   :  { %v707_v34 = vadd.f32 %v1643_v41, %v556_v9 }
 0x14b   :  { %v846_v36 = vpop.f32.mrf.mxu2 }
 0x14c   :  { %v739_v38 = vmax.f32 %v707_v34, 0.0  ;;  %v1275_v39 = vpack.c.bf16 %v846_v36, %v844_v29 }
 0x14e   :  { %1347 = vst [vmem:[%s1789_s4 + $0x8] sm:$0xff] %v1275_v39   ;;  %v469_v40 = vpop.f32.mrf.mxu0  ;;  %v760_v43 = vpack.c.bf16 %v739_v38, %v738_v37 }
 0x14f   :  { %v558_v44 = vpop.f32.mrf.mxu1 }
 0x150   :  { %888 = vmatmul.bf16.gmra.mxu2 %v760_v43  ;;  %v559_v47 = vadd.f32 %v558_v44, %v469_v40 }
 0x152   :  { %v708_v50 = vadd.f32 %v1643_v41, %v559_v47 }
 0x153   :  { %v849_v46 = vpop.f32.mrf.mxu2 }
 0x154   :  { %v740_v53 = vmax.f32 %v708_v50, 0.0 }
 0x156   :  { %v471_v48 = vpop.f32.mrf.mxu0 }
 0x157   :  { %v560_v49 = vpop.f32.mrf.mxu1 }
 0x158   :  { %v561_v16 = vadd.f32 %v560_v49, %v471_v48 }
 0x15a   :  { %v709_v51 = vadd.f32 %v1643_v41, %v561_v16 }
 0x15b   :  { %v851_v52 = vpop.f32.mrf.mxu2 }
 0x15c   :  { %v741_v55 = vmax.f32 %v709_v51, 0.0  ;;  %v1280_v56 = vpack.c.bf16 %v851_v52, %v849_v46 }
 0x15e   :  { %1348 = vst [vmem:[%s1789_s4 + $0x10] sm:$0xff] %v1280_v56   ;;  %v761_v28 = vpack.c.bf16 %v741_v55, %v740_v53 }
 0x160   :  { %893 = vmatmul.bf16.gmra.mxu2 %v761_v28 }
 0x163   :  { %v854_v57 = vpop.f32.mrf.mxu2 }
 0x16b   :  { %v856_v58 = vpop.f32.mrf.mxu2 }
 0x16c   :  { %v1285_v59 = vpack.c.bf16 %v856_v58, %v854_v57 }
 0x16e   :  { %1349 = vst [vmem:[%s1789_s4 + $0x18] sm:$0xff] %v1285_v59  }
 0x173   :  { %v859_v60 = vpop.f32.mrf.mxu2 }
 0x178   :  { %v899_v62 = vpop.f32.mrf.mxu3 }
 0x17b   :  { %v861_v41 = vpop.f32.mrf.mxu2 }
 0x17c   :  { %v1290_v63 = vpack.c.bf16 %v861_v41, %v859_v60 }
 0x17e   :  { %1350 = vst [vmem:[%s1789_s4 + $0x20] sm:$0xff] %v1290_v63  }
 0x180   :  { %v901_v0 = vpop.f32.mrf.mxu3 }
 0x181   :  { %v1330_v1 = vpack.c.bf16 %v901_v0, %v899_v62 }
 0x183   :  { %1358 = vst [vmem:[%s1789_s4 + $0x60] sm:$0xff] %v1330_v1   ;;  %v864_v2 = vpop.f32.mrf.mxu2 }
 0x188   :  { %v904_v3 = vpop.f32.mrf.mxu3 }
 0x18b   :  { %v866_v4 = vpop.f32.mrf.mxu2 }
 0x18c   :  { %v1295_v5 = vpack.c.bf16 %v866_v4, %v864_v2 }
 0x18e   :  { %1351 = vst [vmem:[%s1789_s4 + $0x28] sm:$0xff] %v1295_v5  }
 0x190   :  { %v906_v6 = vpop.f32.mrf.mxu3 }
 0x191   :  { %v1335_v35 = vpack.c.bf16 %v906_v6, %v904_v3 }
 0x193   :  { %1359 = vst [vmem:[%s1789_s4 + $0x68] sm:$0xff] %v1335_v35   ;;  %v869_v7 = vpop.f32.mrf.mxu2 }
 0x198   :  { %v909_v42 = vpop.f32.mrf.mxu3 }
 0x19b   :  { %v871_v8 = vpop.f32.mrf.mxu2 }
 0x19c   :  { %v1300_v10 = vpack.c.bf16 %v871_v8, %v869_v7 }
 0x19e   :  { %1352 = vst [vmem:[%s1789_s4 + $0x30] sm:$0xff] %v1300_v10  }
 0x1a0   :  { %v911_v11 = vpop.f32.mrf.mxu3 }
 0x1a1   :  { %v1340_v45 = vpack.c.bf16 %v911_v11, %v909_v42 }
 0x1a3   :  { %1360 = vst [vmem:[%s1789_s4 + $0x70] sm:$0xff] %v1340_v45   ;;  %v874_v12 = vpop.f32.mrf.mxu2 }
 0x1a8   :  { %v914_v13 = vpop.f32.mrf.mxu3 }
 0x1ab   :  { %v876_v54 = vpop.f32.mrf.mxu2 }
 0x1ac   :  { %v1305_v14 = vpack.c.bf16 %v876_v54, %v874_v12 }
 0x1ae   :  { %1353 = vst [vmem:[%s1789_s4 + $0x38] sm:$0xff] %v1305_v14  }
 0x1b0   :  { %v916_v15 = vpop.f32.mrf.mxu3 }
 0x1b1   :  { %v1345_v17 = vpack.c.bf16 %v916_v15, %v914_v13 }
 0x1b3   :  { %1361 = vst [vmem:[%s1789_s4 + $0x78] sm:$0xff] %v1345_v17   ;;  %v879_v18 = vpop.f32.mrf.mxu2 }
 0x1bb   :  { %v881_v19 = vpop.f32.mrf.mxu2 }
 0x1bc   :  { %v1310_v20 = vpack.c.bf16 %v881_v19, %v879_v18 }
 0x1be   :  { %1354 = vst [vmem:[%s1789_s4 + $0x40] sm:$0xff] %v1310_v20  }
 0x1c3   :  { %v884_v21 = vpop.f32.mrf.mxu2 }
 0x1cb   :  { %v886_v22 = vpop.f32.mrf.mxu2 }
 0x1cc   :  { %v1315_v23 = vpack.c.bf16 %v886_v22, %v884_v21 }
 0x1ce   :  { %1355 = vst [vmem:[%s1789_s4 + $0x48] sm:$0xff] %v1315_v23  }
 0x1d3   :  { %v889_v24 = vpop.f32.mrf.mxu2 }
 0x1db   :  { %v891_v25 = vpop.f32.mrf.mxu2 }
 0x1dc   :  { %v1320_v26 = vpack.c.bf16 %v891_v25, %v889_v24 }
 0x1de   :  { %1356 = vst [vmem:[%s1789_s4 + $0x50] sm:$0xff] %v1320_v26  }
 0x1e3   :  { %v894_v27 = vpop.f32.mrf.mxu2 }
 0x1eb   :  { %v896_v61 = vpop.f32.mrf.mxu2 }
 0x1ec   :  { %v1325_v29 = vpack.c.bf16 %v896_v61, %v894_v27 }
 0x1ee   :  { %1357 = vst [vmem:[%s1789_s4 + $0x58] sm:$0xff] %v1325_v29  }

// kernel: gae_encoder.5
= control target key start
LH: loop header
LB: loop body
LE: loop exit
PB: predicated region body
PF: predicated region fallthrough
CT: control target
= control target key end

     0   :  { %s1401_s1 = inlined_call_operand.vmem [shape: bf16[256,128], index: 1, kind: input, shape index: {}]   ;;  %s1402_s0 = inlined_call_operand.vmem [shape: bf16[256,256], index: 0, kind: input, shape index: {}]   ;;  %s1403_s2 = inlined_call_operand.vmem [shape: f32[1,128], index: 2, kind: input, shape index: {}]   ;;  %s1404_s3 = inlined_call_operand.vmem [shape: f32[256,128], index: 3, kind: output, shape index: {}]  }
   0x1   :  { %v982_v0 = vld [vmem:[%s1401_s1 + $0x38] sm:$0xff]  ;;  %v981_v2 = vld [vmem:[%s1401_s1 + $0x30] sm:$0xff]  ;;  %v980_v4 = vld [vmem:[%s1401_s1 + $0x28] sm:$0xff] }
   0x2   :  { %v990_v1 = vld [vmem:[%s1401_s1 + $0x78] sm:$0xff]  ;;  %402 = vmatpush.bf16.msra.mxu0 %v982_v0  ;;  %991 = vmatpush.bf16.msra.mxu2 %v982_v0  ;;  %v989_v3 = vld [vmem:[%s1401_s1 + $0x70] sm:$0xff]  ;;  %v988_v5 = vld [vmem:[%s1401_s1 + $0x68] sm:$0xff] }
   0x3   :  { %491 = vmatpush.bf16.msra.mxu1 %v990_v1  ;;  %999 = vmatpush.bf16.msra.mxu3 %v990_v1  ;;  %v979_v6 = vld [vmem:[%s1401_s1 + $0x20] sm:$0xff]  ;;  %v978_v8 = vld [vmem:[%s1401_s1 + $0x18] sm:$0xff]  ;;  %v977_v10 = vld [vmem:[%s1401_s1 + $0x10] sm:$0xff] }
   0x4   :  { %v987_v7 = vld [vmem:[%s1401_s1 + $0x60] sm:$0xff]  ;;  %v986_v9 = vld [vmem:[%s1401_s1 + $0x58] sm:$0xff]  ;;  %v985_v11 = vld [vmem:[%s1401_s1 + $0x50] sm:$0xff] }
   0x5   :  { %v976_v12 = vld [vmem:[%s1401_s1 + $0x8] sm:$0xff]  ;;  %v975_v14 = vld [vmem:[%s1401_s1] sm:$0xff]  ;;  %v761_v28 = vld [vmem:[%s1402_s0 + $0x10] sm:$0xf] }
   0x6   :  { %403 = vmatpush.bf16.msra.mxu0 %v981_v2  ;;  %992 = vmatpush.bf16.msra.mxu2 %v981_v2  ;;  %v984_v13 = vld [vmem:[%s1401_s1 + $0x48] sm:$0xff]  ;;  %v983_v15 = vld [vmem:[%s1401_s1 + $0x40] sm:$0xff]  ;;  %v946_v29 = vld [vmem:[%s1402_s0 + $0x14] sm:$0xf0] }
   0x7   :  { %492 = vmatpush.bf16.msra.mxu1 %v989_v3  ;;  %1000 = vmatpush.bf16.msra.mxu3 %v989_v3  ;;  %v753_v16 = vld [vmem:[%s1402_s0] sm:$0xf]  ;;  %v944_v17 = vld [vmem:[%s1402_s0 + $0x4] sm:$0xf0]  ;;  %v943_v20 = vld [vmem:[%s1402_s0 + $0x4] sm:$0xf]  ;;  %v762_v36 = vor.u32 %v946_v29, %v761_v28 }
   0x8   :  { %v817_v18 = vld [vmem:[%s1402_s0 + $0x80] sm:$0xf]  ;;  %v960_v19 = vld [vmem:[%s1402_s0 + $0x84] sm:$0xf0]  ;;  %v755_v21 = vld [vmem:[%s1402_s0 + $0x8] sm:$0xf0]  ;;  %v754_v24 = vor.u32 %v944_v17, %v753_v16 }
   0x9   :  { %v959_v22 = vld [vmem:[%s1402_s0 + $0x84] sm:$0xf]  ;;  %v819_v23 = vld [vmem:[%s1402_s0 + $0x88] sm:$0xf0]  ;;  %v818_v25 = vor.u32 %v960_v19, %v817_v18  ;;  %v758_v26 = vor.u32 %v943_v20, %v755_v21  ;;  %v825_v30 = vld [vmem:[%s1402_s0 + $0x90] sm:$0xf] }
   0xa   :  { %404 = vmatpush.bf16.msra.mxu0 %v980_v4  ;;  %993 = vmatpush.bf16.msra.mxu2 %v980_v4  ;;  %v822_v27 = vor.u32 %v959_v22, %v819_v23  ;;  %v962_v31 = vld [vmem:[%s1402_s0 + $0x94] sm:$0xf0]  ;;  %v945_v32 = vld [vmem:[%s1402_s0 + $0x14] sm:$0xf]  ;;  %v763_v33 = vld [vmem:[%s1402_s0 + $0x18] sm:$0xf0] }
   0xb   :  { %493 = vmatpush.bf16.msra.mxu1 %v988_v5  ;;  %1001 = vmatpush.bf16.msra.mxu3 %v988_v5  ;;  %v961_v34 = vld [vmem:[%s1402_s0 + $0x94] sm:$0xf]  ;;  %v827_v35 = vld [vmem:[%s1402_s0 + $0x98] sm:$0xf0]  ;;  %v826_v37 = vor.u32 %v962_v31, %v825_v30  ;;  %v766_v38 = vor.u32 %v945_v32, %v763_v33  ;;  %v769_v40 = vld [vmem:[%s1402_s0 + $0x20] sm:$0xf] }
   0xc   :  { %v830_v39 = vor.u32 %v961_v34, %v827_v35  ;;  %v948_v41 = vld [vmem:[%s1402_s0 + $0x24] sm:$0xf0]  ;;  %v833_v42 = vld [vmem:[%s1402_s0 + $0xa0] sm:$0xf]  ;;  %v947_v44 = vld [vmem:[%s1402_s0 + $0x24] sm:$0xf] }
   0xd   :  { %v964_v43 = vld [vmem:[%s1402_s0 + $0xa4] sm:$0xf0]  ;;  %v771_v45 = vld [vmem:[%s1402_s0 + $0x28] sm:$0xf0]  ;;  %v963_v46 = vld [vmem:[%s1402_s0 + $0xa4] sm:$0xf]  ;;  %v770_v48 = vor.u32 %v948_v41, %v769_v40 }
   0xe   :  { %405 = vmatpush.bf16.msra.mxu0 %v979_v6  ;;  %994 = vmatpush.bf16.msra.mxu2 %v979_v6  ;;  %v835_v47 = vld [vmem:[%s1402_s0 + $0xa8] sm:$0xf0]  ;;  %v834_v49 = vor.u32 %v964_v43, %v833_v42  ;;  %v774_v50 = vor.u32 %v947_v44, %v771_v45  ;;  %v777_v52 = vld [vmem:[%s1402_s0 + $0x30] sm:$0xf]  ;;  %v950_v53 = vld [vmem:[%s1402_s0 + $0x34] sm:$0xf0] }
   0xf   :  { %494 = vmatpush.bf16.msra.mxu1 %v987_v7  ;;  %1002 = vmatpush.bf16.msra.mxu3 %v987_v7  ;;  %v838_v51 = vor.u32 %v963_v46, %v835_v47  ;;  %v841_v54 = vld [vmem:[%s1402_s0 + $0xb0] sm:$0xf]  ;;  %v966_v55 = vld [vmem:[%s1402_s0 + $0xb4] sm:$0xf0]  ;;  %v949_v56 = vld [vmem:[%s1402_s0 + $0x34] sm:$0xf]  ;;  %v778_v60 = vor.u32 %v950_v53, %v777_v52 }
  0x10   :  { %v779_v57 = vld [vmem:[%s1402_s0 + $0x38] sm:$0xf0]  ;;  %v965_v58 = vld [vmem:[%s1402_s0 + $0xb4] sm:$0xf]  ;;  %v842_v61 = vor.u32 %v966_v55, %v841_v54  ;;  %v785_v0 = vld [vmem:[%s1402_s0 + $0x40] sm:$0xf] }
  0x11   :  { %v843_v59 = vld [vmem:[%s1402_s0 + $0xb8] sm:$0xf0]  ;;  %v782_v62 = vor.u32 %v949_v56, %v779_v57  ;;  %v952_v1 = vld [vmem:[%s1402_s0 + $0x44] sm:$0xf0]  ;;  %v849_v2 = vld [vmem:[%s1402_s0 + $0xc0] sm:$0xf] }
  0x12   :  { %406 = vmatpush.bf16.msra.mxu0 %v978_v8  ;;  %995 = vmatpush.bf16.msra.mxu2 %v978_v8  ;;  %v846_v63 = vor.u32 %v965_v58, %v843_v59  ;;  %v968_v3 = vld [vmem:[%s1402_s0 + $0xc4] sm:$0xf0]  ;;  %v951_v4 = vld [vmem:[%s1402_s0 + $0x44] sm:$0xf]  ;;  %v787_v5 = vld [vmem:[%s1402_s0 + $0x48] sm:$0xf0]  ;;  %v786_v8 = vor.u32 %v952_v1, %v785_v0 }
  0x13   :  { %495 = vmatpush.bf16.msra.mxu1 %v986_v9  ;;  %1003 = vmatpush.bf16.msra.mxu3 %v986_v9  ;;  %v967_v6 = vld [vmem:[%s1402_s0 + $0xc4] sm:$0xf]  ;;  %v851_v7 = vld [vmem:[%s1402_s0 + $0xc8] sm:$0xf0]  ;;  %v850_v9 = vor.u32 %v968_v3, %v849_v2  ;;  %v953_v16 = vld [vmem:[%s1402_s0 + $0x54] sm:$0xf] }
  0x14   :  { %v795_v17 = vld [vmem:[%s1402_s0 + $0x58] sm:$0xf0]  ;;  %v969_v18 = vld [vmem:[%s1402_s0 + $0xd4] sm:$0xf]  ;;  %v955_v28 = vld [vmem:[%s1402_s0 + $0x64] sm:$0xf] }
  0x15   :  { %v859_v19 = vld [vmem:[%s1402_s0 + $0xd8] sm:$0xf0]  ;;  %v798_v22 = vor.u32 %v953_v16, %v795_v17  ;;  %v803_v29 = vld [vmem:[%s1402_s0 + $0x68] sm:$0xf0]  ;;  %v971_v30 = vld [vmem:[%s1402_s0 + $0xe4] sm:$0xf] }
  0x16   :  { %407 = vmatpush.bf16.msra.mxu0 %v977_v10  ;;  %996 = vmatpush.bf16.msra.mxu2 %v977_v10  ;;  %v790_v10 = vor.u32 %v951_v4, %v787_v5  ;;  %v862_v23 = vor.u32 %v969_v18, %v859_v19  ;;  %v867_v31 = vld [vmem:[%s1402_s0 + $0xe8] sm:$0xf0]  ;;  %v806_v34 = vor.u32 %v955_v28, %v803_v29  ;;  %v957_v40 = vld [vmem:[%s1402_s0 + $0x74] sm:$0xf]  ;;  %v811_v41 = vld [vmem:[%s1402_s0 + $0x78] sm:$0xf0] }
  0x17   :  { %496 = vmatpush.bf16.msra.mxu1 %v985_v11  ;;  %1004 = vmatpush.bf16.msra.mxu3 %v985_v11  ;;  %v854_v11 = vor.u32 %v967_v6, %v851_v7  ;;  %v870_v35 = vor.u32 %v971_v30, %v867_v31  ;;  %v973_v42 = vld [vmem:[%s1402_s0 + $0xf4] sm:$0xf]  ;;  %v875_v43 = vld [vmem:[%s1402_s0 + $0xf8] sm:$0xf0]  ;;  %v814_v46 = vor.u32 %v957_v40, %v811_v41 }
  0x18   :  { %v878_v47 = vor.u32 %v973_v42, %v875_v43 }
  0x1a   :  { %408 = vmatpush.bf16.msra.mxu0 %v976_v12  ;;  %997 = vmatpush.bf16.msra.mxu2 %v976_v12  ;;  %v793_v12 = vld [vmem:[%s1402_s0 + $0x50] sm:$0xf] }
  0x1b   :  { %497 = vmatpush.bf16.msra.mxu1 %v984_v13  ;;  %1005 = vmatpush.bf16.msra.mxu3 %v984_v13  ;;  %v954_v13 = vld [vmem:[%s1402_s0 + $0x54] sm:$0xf0] }
  0x1c   :  { %v794_v20 = vor.u32 %v954_v13, %v793_v12 }
  0x1e   :  { %409 = vmatpush.bf16.msra.mxu0 %v975_v14  ;;  %998 = vmatpush.bf16.msra.mxu2 %v975_v14  ;;  %v857_v14 = vld [vmem:[%s1402_s0 + $0xd0] sm:$0xf] }
  0x1f   :  { %498 = vmatpush.bf16.msra.mxu1 %v983_v15  ;;  %1006 = vmatpush.bf16.msra.mxu3 %v983_v15  ;;  %v970_v15 = vld [vmem:[%s1402_s0 + $0xd4] sm:$0xf0] }
  0x20   :  { %v858_v21 = vor.u32 %v970_v15, %v857_v14 }
  0x21   :  { %410 = vmatmul.bf16.vlgmr.msra.gmra.mxu0 %v754_v24  ;;  %450 = vmatmul.bf16.vlgmr.msra.gmra.mxu2 %v818_v25  ;;  %v801_v24 = vld [vmem:[%s1402_s0 + $0x60] sm:$0xf]  ;;  %v956_v25 = vld [vmem:[%s1402_s0 + $0x64] sm:$0xf0] }
  0x22   :  { %499 = vmatmul.bf16.vlgmr.msra.gmra.mxu1 %v758_v26  ;;  %539 = vmatmul.bf16.vlgmr.msra.gmra.mxu3 %v822_v27  ;;  %v865_v26 = vld [vmem:[%s1402_s0 + $0xe0] sm:$0xf]  ;;  %v972_v27 = vld [vmem:[%s1402_s0 + $0xe4] sm:$0xf0]  ;;  %v802_v32 = vor.u32 %v956_v25, %v801_v24 }
  0x23   :  { %v866_v33 = vor.u32 %v972_v27, %v865_v26 }
  0x31   :  { %415 = vmatmul.bf16.gmra.mxu0 %v762_v36  ;;  %455 = vmatmul.bf16.gmra.mxu2 %v826_v37  ;;  %v809_v36 = vld [vmem:[%s1402_s0 + $0x70] sm:$0xf]  ;;  %v958_v37 = vld [vmem:[%s1402_s0 + $0x74] sm:$0xf0] }
  0x32   :  { %504 = vmatmul.bf16.gmra.mxu1 %v766_v38  ;;  %544 = vmatmul.bf16.gmra.mxu3 %v830_v39  ;;  %v873_v38 = vld [vmem:[%s1402_s0 + $0xf0] sm:$0xf]  ;;  %v974_v39 = vld [vmem:[%s1402_s0 + $0xf4] sm:$0xf0]  ;;  %v810_v44 = vor.u32 %v958_v37, %v809_v36 }
  0x33   :  { %v874_v45 = vor.u32 %v974_v39, %v873_v38 }
  0x41   :  { %420 = vmatmul.bf16.gmra.mxu0 %v770_v48  ;;  %460 = vmatmul.bf16.gmra.mxu2 %v834_v49  ;;  %v1271_v49 = vld [vmem:[%s1403_s2] ss:$0 sm:$0xff] }
  0x42   :  { %509 = vmatmul.bf16.gmra.mxu1 %v774_v50  ;;  %549 = vmatmul.bf16.gmra.mxu3 %v838_v51 }
  0x51   :  { %425 = vmatmul.bf16.gmra.mxu0 %v778_v60  ;;  %465 = vmatmul.bf16.gmra.mxu2 %v842_v61 }
  0x52   :  { %514 = vmatmul.bf16.gmra.mxu1 %v782_v62  ;;  %554 = vmatmul.bf16.gmra.mxu3 %v846_v63 }
  0x61   :  { %430 = vmatmul.bf16.gmra.mxu0 %v786_v8  ;;  %470 = vmatmul.bf16.gmra.mxu2 %v850_v9 }
  0x62   :  { %519 = vmatmul.bf16.gmra.mxu1 %v790_v10  ;;  %559 = vmatmul.bf16.gmra.mxu3 %v854_v11 }
  0x71   :  { %435 = vmatmul.bf16.gmra.mxu0 %v794_v20  ;;  %475 = vmatmul.bf16.gmra.mxu2 %v858_v21 }
  0x72   :  { %524 = vmatmul.bf16.gmra.mxu1 %v798_v22  ;;  %564 = vmatmul.bf16.gmra.mxu3 %v862_v23 }
  0x81   :  { %440 = vmatmul.bf16.gmra.mxu0 %v802_v32  ;;  %480 = vmatmul.bf16.gmra.mxu2 %v866_v33 }
  0x82   :  { %529 = vmatmul.bf16.gmra.mxu1 %v806_v34  ;;  %569 = vmatmul.bf16.gmra.mxu3 %v870_v35 }
  0x91   :  { %445 = vmatmul.bf16.gmra.mxu0 %v810_v44  ;;  %485 = vmatmul.bf16.gmra.mxu2 %v874_v45 }
  0x92   :  { %534 = vmatmul.bf16.gmra.mxu1 %v814_v46  ;;  %574 = vmatmul.bf16.gmra.mxu3 %v878_v47 }
  0x9e   :  { %v411_v48 = vpop.f32.mrf.mxu0 }
  0x9f   :  { %v500_v50 = vpop.f32.mrf.mxu1 }
  0xa0   :  { %v501_v51 = vadd.f32 %v500_v50, %v411_v48 }
  0xa2   :  { %v683_v52 = vadd.f32 %v1271_v49, %v501_v51 }
  0xa4   :  { %715 = vst [vmem:[%s1404_s3] sm:$0xff] %v683_v52  ;;  %v451_v53 = vpop.f32.mrf.mxu2 }
  0xa5   :  { %v540_v54 = vpop.f32.mrf.mxu3 }
  0xa6   :  { %v541_v55 = vadd.f32 %v540_v54, %v451_v53  ;;  %v413_v56 = vpop.f32.mrf.mxu0 }
  0xa7   :  { %v502_v57 = vpop.f32.mrf.mxu1 }
  0xa8   :  { %v699_v58 = vadd.f32 %v1271_v49, %v541_v55  ;;  %v503_v59 = vadd.f32 %v502_v57, %v413_v56 }
  0xaa   :  { %731 = vst [vmem:[%s1404_s3 + $0x80] sm:$0xff] %v699_v58  ;;  %v684_v60 = vadd.f32 %v1271_v49, %v503_v59 }
  0xac   :  { %716 = vst [vmem:[%s1404_s3 + $0x8] sm:$0xff] %v684_v60  ;;  %v453_v61 = vpop.f32.mrf.mxu2 }
  0xad   :  { %v542_v62 = vpop.f32.mrf.mxu3 }
  0xae   :  { %v543_v63 = vadd.f32 %v542_v62, %v453_v61  ;;  %v416_v0 = vpop.f32.mrf.mxu0 }
  0xaf   :  { %v505_v1 = vpop.f32.mrf.mxu1 }
  0xb0   :  { %v700_v2 = vadd.f32 %v1271_v49, %v543_v63  ;;  %v506_v3 = vadd.f32 %v505_v1, %v416_v0 }
  0xb2   :  { %732 = vst [vmem:[%s1404_s3 + $0x88] sm:$0xff] %v700_v2  ;;  %v685_v4 = vadd.f32 %v1271_v49, %v506_v3 }
  0xb4   :  { %717 = vst [vmem:[%s1404_s3 + $0x10] sm:$0xff] %v685_v4  ;;  %v456_v5 = vpop.f32.mrf.mxu2 }
  0xb5   :  { %v545_v6 = vpop.f32.mrf.mxu3 }
  0xb6   :  { %v546_v7 = vadd.f32 %v545_v6, %v456_v5  ;;  %v418_v8 = vpop.f32.mrf.mxu0 }
  0xb7   :  { %v507_v9 = vpop.f32.mrf.mxu1 }
  0xb8   :  { %v701_v10 = vadd.f32 %v1271_v49, %v546_v7  ;;  %v508_v11 = vadd.f32 %v507_v9, %v418_v8 }
  0xba   :  { %733 = vst [vmem:[%s1404_s3 + $0x90] sm:$0xff] %v701_v10  ;;  %v686_v12 = vadd.f32 %v1271_v49, %v508_v11 }
  0xbc   :  { %718 = vst [vmem:[%s1404_s3 + $0x18] sm:$0xff] %v686_v12  ;;  %v458_v13 = vpop.f32.mrf.mxu2 }
  0xbd   :  { %v547_v14 = vpop.f32.mrf.mxu3 }
  0xbe   :  { %v548_v15 = vadd.f32 %v547_v14, %v458_v13  ;;  %v421_v16 = vpop.f32.mrf.mxu0 }
  0xbf   :  { %v510_v17 = vpop.f32.mrf.mxu1 }
  0xc0   :  { %v702_v18 = vadd.f32 %v1271_v49, %v548_v15  ;;  %v511_v19 = vadd.f32 %v510_v17, %v421_v16 }
  0xc2   :  { %734 = vst [vmem:[%s1404_s3 + $0x98] sm:$0xff] %v702_v18  ;;  %v687_v20 = vadd.f32 %v1271_v49, %v511_v19 }
  0xc4   :  { %719 = vst [vmem:[%s1404_s3 + $0x20] sm:$0xff] %v687_v20  ;;  %v461_v21 = vpop.f32.mrf.mxu2 }
  0xc5   :  { %v550_v22 = vpop.f32.mrf.mxu3 }
  0xc6   :  { %v551_v23 = vadd.f32 %v550_v22, %v461_v21  ;;  %v423_v24 = vpop.f32.mrf.mxu0 }
  0xc7   :  { %v512_v25 = vpop.f32.mrf.mxu1 }
  0xc8   :  { %v703_v26 = vadd.f32 %v1271_v49, %v551_v23  ;;  %v513_v27 = vadd.f32 %v512_v25, %v423_v24 }
  0xca   :  { %735 = vst [vmem:[%s1404_s3 + $0xa0] sm:$0xff] %v703_v26  ;;  %v688_v28 = vadd.f32 %v1271_v49, %v513_v27 }
  0xcc   :  { %720 = vst [vmem:[%s1404_s3 + $0x28] sm:$0xff] %v688_v28  ;;  %v463_v29 = vpop.f32.mrf.mxu2 }
  0xcd   :  { %v552_v30 = vpop.f32.mrf.mxu3 }
  0xce   :  { %v553_v31 = vadd.f32 %v552_v30, %v463_v29  ;;  %v426_v32 = vpop.f32.mrf.mxu0 }
  0xcf   :  { %v515_v33 = vpop.f32.mrf.mxu1 }
  0xd0   :  { %v704_v34 = vadd.f32 %v1271_v49, %v553_v31  ;;  %v516_v35 = vadd.f32 %v515_v33, %v426_v32 }
  0xd2   :  { %736 = vst [vmem:[%s1404_s3 + $0xa8] sm:$0xff] %v704_v34  ;;  %v689_v36 = vadd.f32 %v1271_v49, %v516_v35 }
  0xd4   :  { %721 = vst [vmem:[%s1404_s3 + $0x30] sm:$0xff] %v689_v36  ;;  %v466_v37 = vpop.f32.mrf.mxu2 }
  0xd5   :  { %v555_v38 = vpop.f32.mrf.mxu3 }
  0xd6   :  { %v556_v39 = vadd.f32 %v555_v38, %v466_v37  ;;  %v428_v40 = vpop.f32.mrf.mxu0 }
  0xd7   :  { %v517_v41 = vpop.f32.mrf.mxu1 }
  0xd8   :  { %v705_v42 = vadd.f32 %v1271_v49, %v556_v39  ;;  %v518_v43 = vadd.f32 %v517_v41, %v428_v40 }
  0xda   :  { %737 = vst [vmem:[%s1404_s3 + $0xb0] sm:$0xff] %v705_v42  ;;  %v690_v44 = vadd.f32 %v1271_v49, %v518_v43 }
  0xdc   :  { %722 = vst [vmem:[%s1404_s3 + $0x38] sm:$0xff] %v690_v44  ;;  %v468_v45 = vpop.f32.mrf.mxu2 }
  0xdd   :  { %v557_v46 = vpop.f32.mrf.mxu3 }
  0xde   :  { %v558_v47 = vadd.f32 %v557_v46, %v468_v45  ;;  %v431_v48 = vpop.f32.mrf.mxu0 }
  0xdf   :  { %v520_v50 = vpop.f32.mrf.mxu1 }
  0xe0   :  { %v706_v51 = vadd.f32 %v1271_v49, %v558_v47  ;;  %v521_v52 = vadd.f32 %v520_v50, %v431_v48 }
  0xe2   :  { %738 = vst [vmem:[%s1404_s3 + $0xb8] sm:$0xff] %v706_v51  ;;  %v691_v53 = vadd.f32 %v1271_v49, %v521_v52 }
  0xe4   :  { %723 = vst [vmem:[%s1404_s3 + $0x40] sm:$0xff] %v691_v53  ;;  %v471_v54 = vpop.f32.mrf.mxu2 }
  0xe5   :  { %v560_v55 = vpop.f32.mrf.mxu3 }
  0xe6   :  { %v561_v56 = vadd.f32 %v560_v55, %v471_v54  ;;  %v433_v57 = vpop.f32.mrf.mxu0 }
  0xe7   :  { %v522_v58 = vpop.f32.mrf.mxu1 }
  0xe8   :  { %v707_v59 = vadd.f32 %v1271_v49, %v561_v56  ;;  %v523_v60 = vadd.f32 %v522_v58, %v433_v57 }
  0xea   :  { %739 = vst [vmem:[%s1404_s3 + $0xc0] sm:$0xff] %v707_v59  ;;  %v692_v61 = vadd.f32 %v1271_v49, %v523_v60 }
  0xec   :  { %724 = vst [vmem:[%s1404_s3 + $0x48] sm:$0xff] %v692_v61  ;;  %v473_v62 = vpop.f32.mrf.mxu2 }
  0xed   :  { %v562_v63 = vpop.f32.mrf.mxu3 }
  0xee   :  { %v563_v0 = vadd.f32 %v562_v63, %v473_v62  ;;  %v436_v1 = vpop.f32.mrf.mxu0 }
  0xef   :  { %v525_v2 = vpop.f32.mrf.mxu1 }
  0xf0   :  { %v708_v3 = vadd.f32 %v1271_v49, %v563_v0  ;;  %v526_v4 = vadd.f32 %v525_v2, %v436_v1 }
  0xf2   :  { %740 = vst [vmem:[%s1404_s3 + $0xc8] sm:$0xff] %v708_v3  ;;  %v693_v5 = vadd.f32 %v1271_v49, %v526_v4 }
  0xf4   :  { %725 = vst [vmem:[%s1404_s3 + $0x50] sm:$0xff] %v693_v5  ;;  %v476_v6 = vpop.f32.mrf.mxu2 }
  0xf5   :  { %v565_v7 = vpop.f32.mrf.mxu3 }
  0xf6   :  { %v566_v8 = vadd.f32 %v565_v7, %v476_v6  ;;  %v438_v9 = vpop.f32.mrf.mxu0 }
  0xf7   :  { %v527_v10 = vpop.f32.mrf.mxu1 }
  0xf8   :  { %v709_v11 = vadd.f32 %v1271_v49, %v566_v8  ;;  %v528_v12 = vadd.f32 %v527_v10, %v438_v9 }
  0xfa   :  { %741 = vst [vmem:[%s1404_s3 + $0xd0] sm:$0xff] %v709_v11  ;;  %v694_v13 = vadd.f32 %v1271_v49, %v528_v12 }
  0xfc   :  { %726 = vst [vmem:[%s1404_s3 + $0x58] sm:$0xff] %v694_v13  ;;  %v478_v14 = vpop.f32.mrf.mxu2 }
  0xfd   :  { %v567_v15 = vpop.f32.mrf.mxu3 }
  0xfe   :  { %v568_v16 = vadd.f32 %v567_v15, %v478_v14  ;;  %v441_v17 = vpop.f32.mrf.mxu0 }
  0xff   :  { %v530_v18 = vpop.f32.mrf.mxu1 }
 0x100   :  { %v710_v19 = vadd.f32 %v1271_v49, %v568_v16  ;;  %v531_v20 = vadd.f32 %v530_v18, %v441_v17 }
 0x102   :  { %742 = vst [vmem:[%s1404_s3 + $0xd8] sm:$0xff] %v710_v19  ;;  %v695_v21 = vadd.f32 %v1271_v49, %v531_v20 }
 0x104   :  { %727 = vst [vmem:[%s1404_s3 + $0x60] sm:$0xff] %v695_v21  ;;  %v481_v22 = vpop.f32.mrf.mxu2 }
 0x105   :  { %v570_v23 = vpop.f32.mrf.mxu3 }
 0x106   :  { %v571_v24 = vadd.f32 %v570_v23, %v481_v22  ;;  %v443_v25 = vpop.f32.mrf.mxu0 }
 0x107   :  { %v532_v26 = vpop.f32.mrf.mxu1 }
 0x108   :  { %v711_v27 = vadd.f32 %v1271_v49, %v571_v24  ;;  %v533_v28 = vadd.f32 %v532_v26, %v443_v25 }
 0x10a   :  { %743 = vst [vmem:[%s1404_s3 + $0xe0] sm:$0xff] %v711_v27  ;;  %v696_v29 = vadd.f32 %v1271_v49, %v533_v28 }
 0x10c   :  { %728 = vst [vmem:[%s1404_s3 + $0x68] sm:$0xff] %v696_v29  ;;  %v483_v30 = vpop.f32.mrf.mxu2 }
 0x10d   :  { %v572_v31 = vpop.f32.mrf.mxu3 }
 0x10e   :  { %v573_v32 = vadd.f32 %v572_v31, %v483_v30  ;;  %v446_v33 = vpop.f32.mrf.mxu0 }
 0x10f   :  { %v535_v34 = vpop.f32.mrf.mxu1 }
 0x110   :  { %v712_v35 = vadd.f32 %v1271_v49, %v573_v32  ;;  %v536_v36 = vadd.f32 %v535_v34, %v446_v33 }
 0x112   :  { %744 = vst [vmem:[%s1404_s3 + $0xe8] sm:$0xff] %v712_v35  ;;  %v697_v37 = vadd.f32 %v1271_v49, %v536_v36 }
 0x114   :  { %729 = vst [vmem:[%s1404_s3 + $0x70] sm:$0xff] %v697_v37  ;;  %v486_v38 = vpop.f32.mrf.mxu2 }
 0x115   :  { %v575_v39 = vpop.f32.mrf.mxu3 }
 0x116   :  { %v576_v40 = vadd.f32 %v575_v39, %v486_v38  ;;  %v448_v41 = vpop.f32.mrf.mxu0 }
 0x117   :  { %v537_v42 = vpop.f32.mrf.mxu1 }
 0x118   :  { %v713_v43 = vadd.f32 %v1271_v49, %v576_v40  ;;  %v538_v44 = vadd.f32 %v537_v42, %v448_v41 }
 0x11a   :  { %745 = vst [vmem:[%s1404_s3 + $0xf0] sm:$0xff] %v713_v43  ;;  %v698_v45 = vadd.f32 %v1271_v49, %v538_v44 }
 0x11c   :  { %730 = vst [vmem:[%s1404_s3 + $0x78] sm:$0xff] %v698_v45  ;;  %v488_v46 = vpop.f32.mrf.mxu2 }
 0x11d   :  { %v577_v47 = vpop.f32.mrf.mxu3 }
 0x11e   :  { %v578_v48 = vadd.f32 %v577_v47, %v488_v46 }
 0x120   :  { %v714_v50 = vadd.f32 %v1271_v49, %v578_v48 }
 0x122   :  { %746 = vst [vmem:[%s1404_s3 + $0xf8] sm:$0xff] %v714_v50 }

</bundles_post_ra>
